<compile_context>
chip_gen: v5e
topology: v5e:2x2
jax: 0.10.0
libtpu: 0.0.40
codegen_flags: <defaults>
</compile_context>

<pallas_src>
import jax
import jax.numpy as jnp
from jax.experimental import pallas as pl
from jax.experimental.pallas import tpu as pltpu


def _round_up(x, m):
    return ((x + m - 1) // m) * m


# ---------------------------------------------------------------------------
# Kernel 1: one image per grid step ("parallel" batch axis).
#   image -> in-VMEM halo pad -> transposed im2col (lane-dense slabs)
#   -> single MXU matmul (K = 9*Cin, f32 accumulation) -> bias + ReLU
#   -> global average pool -> one lane-dense (1, Cfp) feature row.
# ---------------------------------------------------------------------------
def conv_pool_kernel(x_ref, cwt_ref, cb_ref, feat_ref, xpad_sc, patch_sc):
    _, cin, h, w = x_ref.shape
    hw = h * w
    cfp = cwt_ref.shape[0]

    # In-kernel 'same' padding: zero the halo scratch, copy the interior.
    # (Zero-once under pl.when(program_id==0) would be wrong with the
    # "parallel" batch axis: each core gets its own scratch and a different
    # first step.  The buffer is tiny, so per-step zeroing is noise.)
    xpad_sc[...] = jnp.zeros_like(xpad_sc)
    xpad_sc[:, 1:h + 1, 1:w + 1] = x_ref[0]
    xp = xpad_sc[...]

    # Transposed im2col: rows = (kh, kw, cin), lanes = H*W, so every (kh, kw)
    # write is a lane-dense slab (no masked Cin-wide column stores).
    for kh in range(3):
        for kw in range(3):
            r = (kh * 3 + kw) * cin
            patch_sc[r:r + cin, :] = (
                xp[:, kh:kh + h, kw:kw + w].reshape(cin, hw)
                .astype(patch_sc.dtype))

    # One MXU matmul for the whole 3x3 conv: (Cfp, 9*Cin) @ (9*Cin, H*W),
    # bf16 operands, f32 accumulation; then bias + ReLU in f32.
    conv = jnp.dot(cwt_ref[...], patch_sc[...],
                   preferred_element_type=jnp.float32)
    conv = jnp.maximum(conv + cb_ref[...], 0.0)

    # Global average pool folded as sum * 1/(H*W); emit a lane-dense row.
    # TODO(synk): for large images, chunk the H*W lane dim and accumulate the
    # pooled sum per chunk so the (Cfp, H*W) intermediate never materializes.
    pooled = jnp.sum(conv, axis=1, keepdims=True) * (1.0 / hw)   # (Cfp, 1)
    feat_ref[...] = pooled.T.reshape(1, 1, cfp)


# ---------------------------------------------------------------------------
# Kernel 2: full-batch Linear + BatchNorm1d (training mode, biased variance,
# eps = 1e-5) for one tile of embedding columns.  Per-column statistics are
# independent, so the column-tile grid axis is "parallel".
# ---------------------------------------------------------------------------
def linear_bn_kernel(f_ref, lw_ref, lb_ref, g_ref, bt_ref, out_ref):
    y = jnp.dot(f_ref[...].astype(lw_ref.dtype), lw_ref[...],
                preferred_element_type=jnp.float32) + lb_ref[...]
    mean = jnp.mean(y, axis=0, keepdims=True)
    var = jnp.mean((y - mean) ** 2, axis=0, keepdims=True)
    out_ref[...] = (y - mean) * jax.lax.rsqrt(var + 1e-5) * g_ref[...] \
        + bt_ref[...]


# ---------------------------------------------------------------------------
# Wrapper: parameter padding / layout prep, per-generation VMEM budget,
# grids and BlockSpecs.
# ---------------------------------------------------------------------------
def encoder_cnn_forward(images_nchw, params, *, mxu_dtype=jnp.bfloat16,
                        lane_multiple=128, embed_col_tile=512):
    """Backbone (conv3x3 + ReLU + GAP) -> Linear -> BatchNorm1d.

    mxu_dtype:     MXU operand dtype (bf16 is native on v5e/v6e/v7x; all
                   accumulation stays f32; pass jnp.float32 for exact f32).
    lane_multiple: pad Cf / E to this multiple (128; use 256 to fill the full
                   256-wide N dim of the v6e/v7x MXU).
    """
    f32 = jnp.float32
    x = images_nchw.astype(f32)                      # NCHW, no transpose needed
    B, Cin, H, W = x.shape

    Cf = params["conv_w"].shape[-1]
    E = params["lin_w"].shape[1]
    Cfp = _round_up(Cf, lane_multiple)
    Ep = _round_up(E, lane_multiple)

    # conv weight (3,3,Cin,Cf) -> transposed im2col layout (Cfp, 9*Cin); the
    # (kh, kw, cin) row order matches the kernel's patch rows.
    cwt = params["conv_w"].astype(f32).reshape(9 * Cin, Cf).T
    cwt = jnp.pad(cwt, ((0, Cfp - Cf), (0, 0))).astype(mxu_dtype)
    cb = jnp.pad(params["conv_b"].astype(f32).reshape(Cf, 1),
                 ((0, Cfp - Cf), (0, 0)))
    lw = jnp.pad(params["lin_w"].astype(f32),
                 ((0, Cfp - Cf), (0, Ep - E))).astype(mxu_dtype)
    lb = jnp.pad(params["lin_b"].astype(f32).reshape(1, E),
                 ((0, 0), (0, Ep - E)))
    gamma = jnp.pad(params["gamma"].astype(f32).reshape(1, E),
                    ((0, 0), (0, Ep - E)), constant_values=1.0)
    beta = jnp.pad(params["beta"].astype(f32).reshape(1, E),
                   ((0, 0), (0, Ep - E)))

    # Per-generation VMEM budget: ~3/4 of physical, capped at 96 MiB
    # (-> ~96 MiB on 128 MiB v5e/v6e, 48 MiB on 64 MiB-per-TC v7x).
    try:
        vmem_cap = int(pltpu.get_tpu_info().vmem_capacity_bytes)
    except Exception:
        vmem_cap = 64 * 1024 * 1024
    vmem_limit = int(min((vmem_cap * 3) // 4, 96 * 1024 * 1024))

    # ---- kernel 1: per-image conv + ReLU + global average pool -------------
    # grid=(B,): >= B pipeline steps, the image DMA double-buffers for free,
    # and "parallel" lets v7x shard the batch across both TensorCores (no
    # carried full-batch state -- BatchNorm lives in kernel 2).
    feats3 = pl.pallas_call(
        conv_pool_kernel,
        out_shape=jax.ShapeDtypeStruct((B, 1, Cfp), f32),
        grid=(B,),
        in_specs=[
            pl.BlockSpec((1, Cin, H, W), lambda b: (b, 0, 0, 0)),  # image
            pl.BlockSpec((Cfp, 9 * Cin), lambda b: (0, 0)),        # conv W^T
            pl.BlockSpec((Cfp, 1), lambda b: (0, 0)),              # conv bias
        ],
        out_specs=pl.BlockSpec((1, 1, Cfp), lambda b: (b, 0, 0)),
        scratch_shapes=[
            pltpu.VMEM((Cin, H + 2, W + 2), f32),       # halo-padded image
            pltpu.VMEM((9 * Cin, H * W), mxu_dtype),    # transposed im2col
        ],
        compiler_params=pltpu.CompilerParams(
            dimension_semantics=("parallel",),
            vmem_limit_bytes=vmem_limit,
        ),
    )(x, cwt, cb)
    feats = feats3.reshape(B, Cfp)

    # ---- kernel 2: full-batch Linear + BatchNorm1d, tiled over E columns ---
    ET = min(Ep, _round_up(embed_col_tile, lane_multiple))
    while Ep % ET:
        ET -= lane_multiple
    out_p = pl.pallas_call(
        linear_bn_kernel,
        out_shape=jax.ShapeDtypeStruct((B, Ep), f32),
        grid=(Ep // ET,),
        in_specs=[
            pl.BlockSpec((B, Cfp), lambda j: (0, 0)),    # pooled features
            pl.BlockSpec((Cfp, ET), lambda j: (0, j)),   # linear weight
            pl.BlockSpec((1, ET), lambda j: (0, j)),     # linear bias
            pl.BlockSpec((1, ET), lambda j: (0, j)),     # BN gamma
            pl.BlockSpec((1, ET), lambda j: (0, j)),     # BN beta
        ],
        out_specs=pl.BlockSpec((B, ET), lambda j: (0, j)),
        compiler_params=pltpu.CompilerParams(
            dimension_semantics=("parallel",),
            vmem_limit_bytes=vmem_limit,
        ),
    )(feats, lw, lb, gamma, beta)

    return out_p[:, :E]


# ---------------------------------------------------------------------------
# Pure-JAX reference mirroring the kernels' numerics (MXU operands cast to
# mxu_dtype, all accumulation in f32).  With mxu_dtype=jnp.float32 this is
# the exact f32 semantics of the PyTorch module.
# ---------------------------------------------------------------------------
def encoder_cnn_ref(images_nchw, params, mxu_dtype=jnp.bfloat16):
    f32 = jnp.float32

    def q(a):  # mirror the kernel's MXU-operand quantization
        return a.astype(f32).astype(mxu_dtype).astype(f32)

    B, Cin, H, W = images_nchw.shape
    Cf = params["conv_w"].shape[-1]
    x = q(images_nchw)
    wq = q(params["conv_w"])                                   # (3,3,Cin,Cf)
    xp = jnp.pad(x, ((0, 0), (0, 0), (1, 1), (1, 1)))
    acc = jnp.zeros((B, Cf, H, W), f32)
    for kh in range(3):
        for kw in range(3):
            acc = acc + jnp.einsum("bchw,cf->bfhw",
                                   xp[:, :, kh:kh + H, kw:kw + W],
                                   wq[kh, kw])
    acc = jnp.maximum(acc + params["conv_b"].astype(f32).reshape(1, Cf, 1, 1),
                      0.0)
    feats = jnp.mean(acc, axis=(2, 3))                         # (B, Cf)
    y = q(feats) @ q(params["lin_w"]) + params["lin_b"].astype(f32)
    mean = jnp.mean(y, axis=0, keepdims=True)
    var = jnp.mean((y - mean) ** 2, axis=0, keepdims=True)
    return (y - mean) * jax.lax.rsqrt(var + 1e-5) \
        * params["gamma"].astype(f32) + params["beta"].astype(f32)


if __name__ == "__main__":
    # Small deterministic shapes.  Batch of 4 gives the conv kernel >= 4
    # pipelined grid steps and a well-conditioned BatchNorm batch; the
    # synthetic backbone width is lane-dense (128) and embed_size = 32 is
    # padded to 128 internally.
    B, C_IN, H, W = 4, 4, 16, 16
    C_FEAT, EMBED = 128, 32

    key = jax.random.PRNGKey(0)
    k_img, k_cw, k_cb, k_lw, k_lb = jax.random.split(key, 5)

    images = jax.random.normal(k_img, (B, C_IN, H, W), dtype=jnp.float32)

    params = {
        "conv_w": 0.1 * jax.random.normal(k_cw, (3, 3, C_IN, C_FEAT),
                                          jnp.float32),
        "conv_b": 0.1 * jax.random.normal(k_cb, (1, C_FEAT), jnp.float32),
        # torch Linear stores (out, in); kept pre-transposed as (in, out).
        "lin_w": 0.1 * jax.random.normal(k_lw, (C_FEAT, EMBED), jnp.float32),
        "lin_b": 0.1 * jax.random.normal(k_lb, (1, EMBED), jnp.float32),
        "gamma": jnp.ones((1, EMBED), jnp.float32),   # BN weight init = 1
        "beta": jnp.zeros((1, EMBED), jnp.float32),   # BN bias init = 0
    }

    out = encoder_cnn_forward(images, params)          # bf16 MXU, f32 accum
    out = jax.block_until_ready(out)

    ref = encoder_cnn_ref(images, params)              # matched numerics
    assert out.shape == (B, EMBED)
    max_err = float(jnp.max(jnp.abs(out - ref)))
    assert jnp.allclose(out, ref, atol=2e-2, rtol=2e-2), max_err

    print("KERNEL_OK")
</pallas_src>

<mosaic_0001>
module attributes {stable_mosaic.version = 11 : i64} {
  func.func @conv_pool_kernel(%arg0: i32, %arg1: memref<1x4x16x16xf32, #tpu.memory_space<vmem>>, %arg2: memref<128x36xbf16, #tpu.memory_space<vmem>>, %arg3: memref<128x1xf32, #tpu.memory_space<vmem>>, %arg4: memref<1x1x128xf32, #tpu.memory_space<vmem>>, %arg5: memref<4x18x18xf32, #tpu.memory_space<vmem>>, %arg6: memref<36x256xbf16, #tpu.memory_space<vmem>>) attributes {dimension_semantics = [#tpu.dimension_semantics<parallel>], iteration_bounds = array<i64: 4>, scalar_prefetch = 0 : i64, scratch_operands = 2 : i64, tpu.core_type = #tpu.core_type<tc>, window_params = [{transform_indices = @transform_0, window_bounds = array<i64: 1, 4, 16, 16>}, {pipeline_mode = #tpu.pipeline_mode<synchronous>, transform_indices = @transform_1, window_bounds = array<i64: 128, 36>}, {pipeline_mode = #tpu.pipeline_mode<synchronous>, transform_indices = @transform_2, window_bounds = array<i64: 128, 1>}, {transform_indices = @transform_3, window_bounds = array<i64: 1, 1, 128>}]} {
    %cst = arith.constant 0.000000e+00 : f32
    %0 = vector.broadcast %cst : f32 to vector<4x18x18xf32>
    %c0 = arith.constant 0 : index
    %c0_0 = arith.constant 0 : index
    %c0_1 = arith.constant 0 : index
    %1 = vector.load %arg5[%c0, %c0_0, %c0_1] : memref<4x18x18xf32, #tpu.memory_space<vmem>>, vector<4x18x18xf32>
    tpu.vector_store %arg5[%c0, %c0_0, %c0_1], %0 {strides = array<i32>} : memref<4x18x18xf32, #tpu.memory_space<vmem>>, vector<4x18x18xf32>,
    %c0_2 = arith.constant 0 : index
    %c0_3 = arith.constant 0 : index
    %c0_4 = arith.constant 0 : index
    %c0_5 = arith.constant 0 : index
    %2 = vector.load %arg1[%c0_2, %c0_3, %c0_4, %c0_5] : memref<1x4x16x16xf32, #tpu.memory_space<vmem>>, vector<1x4x16x16xf32>
    %3 = vector.shape_cast %2 : vector<1x4x16x16xf32> to vector<4x16x16xf32>
    %c0_6 = arith.constant 0 : index
    %c1 = arith.constant 1 : index
    %c1_7 = arith.constant 1 : index
    %4 = vector.load %arg5[%c0_6, %c1, %c1_7] : memref<4x18x18xf32, #tpu.memory_space<vmem>>, vector<4x16x16xf32>
    tpu.vector_store %arg5[%c0_6, %c1, %c1_7], %3 {strides = array<i32>} : memref<4x18x18xf32, #tpu.memory_space<vmem>>, vector<4x16x16xf32>,
    %c0_8 = arith.constant 0 : index
    %c0_9 = arith.constant 0 : index
    %c0_10 = arith.constant 0 : index
    %5 = vector.load %arg5[%c0_8, %c0_9, %c0_10] : memref<4x18x18xf32, #tpu.memory_space<vmem>>, vector<4x18x18xf32>
    %6 = vector.extract_strided_slice %5 {offsets = [0, 0, 0], sizes = [4, 16, 16], strides = [1, 1, 1]} : vector<4x18x18xf32> to vector<4x16x16xf32>
    %7 = vector.shape_cast %6 : vector<4x16x16xf32> to vector<4x256xf32>
    %8 = arith.truncf %7 : vector<4x256xf32> to vector<4x256xbf16>
    %c0_11 = arith.constant 0 : index
    %c0_12 = arith.constant 0 : index
    %9 = vector.load %arg6[%c0_11, %c0_12] : memref<36x256xbf16, #tpu.memory_space<vmem>>, vector<4x256xbf16>
    tpu.vector_store %arg6[%c0_11, %c0_12], %8 {strides = array<i32>} : memref<36x256xbf16, #tpu.memory_space<vmem>>, vector<4x256xbf16>,
    %10 = vector.extract_strided_slice %5 {offsets = [0, 0, 1], sizes = [4, 16, 16], strides = [1, 1, 1]} : vector<4x18x18xf32> to vector<4x16x16xf32>
    %11 = vector.shape_cast %10 : vector<4x16x16xf32> to vector<4x256xf32>
    %12 = arith.truncf %11 : vector<4x256xf32> to vector<4x256xbf16>
    %c4 = arith.constant 4 : index
    %c0_13 = arith.constant 0 : index
    %13 = vector.load %arg6[%c4, %c0_13] : memref<36x256xbf16, #tpu.memory_space<vmem>>, vector<4x256xbf16>
    tpu.vector_store %arg6[%c4, %c0_13], %12 {strides = array<i32>} : memref<36x256xbf16, #tpu.memory_space<vmem>>, vector<4x256xbf16>,
    %14 = vector.extract_strided_slice %5 {offsets = [0, 0, 2], sizes = [4, 16, 16], strides = [1, 1, 1]} : vector<4x18x18xf32> to vector<4x16x16xf32>
    %15 = vector.shape_cast %14 : vector<4x16x16xf32> to vector<4x256xf32>
    %16 = arith.truncf %15 : vector<4x256xf32> to vector<4x256xbf16>
    %c8 = arith.constant 8 : index
    %c0_14 = arith.constant 0 : index
    %17 = vector.load %arg6[%c8, %c0_14] : memref<36x256xbf16, #tpu.memory_space<vmem>>, vector<4x256xbf16>
    tpu.vector_store %arg6[%c8, %c0_14], %16 {strides = array<i32>} : memref<36x256xbf16, #tpu.memory_space<vmem>>, vector<4x256xbf16>,
    %18 = vector.extract_strided_slice %5 {offsets = [0, 1, 0], sizes = [4, 16, 16], strides = [1, 1, 1]} : vector<4x18x18xf32> to vector<4x16x16xf32>
    %19 = vector.shape_cast %18 : vector<4x16x16xf32> to vector<4x256xf32>
    %20 = arith.truncf %19 : vector<4x256xf32> to vector<4x256xbf16>
    %c12 = arith.constant 12 : index
    %c0_15 = arith.constant 0 : index
    %21 = vector.load %arg6[%c12, %c0_15] : memref<36x256xbf16, #tpu.memory_space<vmem>>, vector<4x256xbf16>
    tpu.vector_store %arg6[%c12, %c0_15], %20 {strides = array<i32>} : memref<36x256xbf16, #tpu.memory_space<vmem>>, vector<4x256xbf16>,
    %22 = vector.extract_strided_slice %5 {offsets = [0, 1, 1], sizes = [4, 16, 16], strides = [1, 1, 1]} : vector<4x18x18xf32> to vector<4x16x16xf32>
    %23 = vector.shape_cast %22 : vector<4x16x16xf32> to vector<4x256xf32>
    %24 = arith.truncf %23 : vector<4x256xf32> to vector<4x256xbf16>
    %c16 = arith.constant 16 : index
    %c0_16 = arith.constant 0 : index
    %25 = vector.load %arg6[%c16, %c0_16] : memref<36x256xbf16, #tpu.memory_space<vmem>>, vector<4x256xbf16>
    tpu.vector_store %arg6[%c16, %c0_16], %24 {strides = array<i32>} : memref<36x256xbf16, #tpu.memory_space<vmem>>, vector<4x256xbf16>,
    %26 = vector.extract_strided_slice %5 {offsets = [0, 1, 2], sizes = [4, 16, 16], strides = [1, 1, 1]} : vector<4x18x18xf32> to vector<4x16x16xf32>
    %27 = vector.shape_cast %26 : vector<4x16x16xf32> to vector<4x256xf32>
    %28 = arith.truncf %27 : vector<4x256xf32> to vector<4x256xbf16>
    %c20 = arith.constant 20 : index
    %c0_17 = arith.constant 0 : index
    %29 = vector.load %arg6[%c20, %c0_17] : memref<36x256xbf16, #tpu.memory_space<vmem>>, vector<4x256xbf16>
    tpu.vector_store %arg6[%c20, %c0_17], %28 {strides = array<i32>} : memref<36x256xbf16, #tpu.memory_space<vmem>>, vector<4x256xbf16>,
    %30 = vector.extract_strided_slice %5 {offsets = [0, 2, 0], sizes = [4, 16, 16], strides = [1, 1, 1]} : vector<4x18x18xf32> to vector<4x16x16xf32>
    %31 = vector.shape_cast %30 : vector<4x16x16xf32> to vector<4x256xf32>
    %32 = arith.truncf %31 : vector<4x256xf32> to vector<4x256xbf16>
    %c24 = arith.constant 24 : index
    %c0_18 = arith.constant 0 : index
    %33 = vector.load %arg6[%c24, %c0_18] : memref<36x256xbf16, #tpu.memory_space<vmem>>, vector<4x256xbf16>
    tpu.vector_store %arg6[%c24, %c0_18], %32 {strides = array<i32>} : memref<36x256xbf16, #tpu.memory_space<vmem>>, vector<4x256xbf16>,
    %34 = vector.extract_strided_slice %5 {offsets = [0, 2, 1], sizes = [4, 16, 16], strides = [1, 1, 1]} : vector<4x18x18xf32> to vector<4x16x16xf32>
    %35 = vector.shape_cast %34 : vector<4x16x16xf32> to vector<4x256xf32>
    %36 = arith.truncf %35 : vector<4x256xf32> to vector<4x256xbf16>
    %c28 = arith.constant 28 : index
    %c0_19 = arith.constant 0 : index
    %37 = vector.load %arg6[%c28, %c0_19] : memref<36x256xbf16, #tpu.memory_space<vmem>>, vector<4x256xbf16>
    tpu.vector_store %arg6[%c28, %c0_19], %36 {strides = array<i32>} : memref<36x256xbf16, #tpu.memory_space<vmem>>, vector<4x256xbf16>,
    %38 = vector.extract_strided_slice %5 {offsets = [0, 2, 2], sizes = [4, 16, 16], strides = [1, 1, 1]} : vector<4x18x18xf32> to vector<4x16x16xf32>
    %39 = vector.shape_cast %38 : vector<4x16x16xf32> to vector<4x256xf32>
    %40 = arith.truncf %39 : vector<4x256xf32> to vector<4x256xbf16>
    %c32 = arith.constant 32 : index
    %c0_20 = arith.constant 0 : index
    %41 = vector.load %arg6[%c32, %c0_20] : memref<36x256xbf16, #tpu.memory_space<vmem>>, vector<4x256xbf16>
    tpu.vector_store %arg6[%c32, %c0_20], %40 {strides = array<i32>} : memref<36x256xbf16, #tpu.memory_space<vmem>>, vector<4x256xbf16>,
    %c0_21 = arith.constant 0 : index
    %c0_22 = arith.constant 0 : index
    %42 = vector.load %arg2[%c0_21, %c0_22] : memref<128x36xbf16, #tpu.memory_space<vmem>>, vector<128x36xbf16>
    %c0_23 = arith.constant 0 : index
    %c0_24 = arith.constant 0 : index
    %43 = vector.load %arg6[%c0_23, %c0_24] : memref<36x256xbf16, #tpu.memory_space<vmem>>, vector<36x256xbf16>
    %cst_25 = arith.constant dense<0.000000e+00> : vector<128x256xf32>
    %44 = tpu.matmul %42, %43, %cst_25 {dimension_numbers = #tpu.dot_dimension_numbers<[1], [0], [0], [1], [0, 0, 1, 1], [], []>} : vector<128x36xbf16>, vector<36x256xbf16>, vector<128x256xf32> -> vector<128x256xf32>
    %c0_26 = arith.constant 0 : index
    %c0_27 = arith.constant 0 : index
    %45 = vector.load %arg3[%c0_26, %c0_27] : memref<128x1xf32, #tpu.memory_space<vmem>>, vector<128x1xf32>
    %46 = vector.broadcast %45 : vector<128x1xf32> to vector<128x256xf32>
    %47 = arith.addf %44, %46 : vector<128x256xf32>
    %cst_28 = arith.constant 0.000000e+00 : f32
    %48 = vector.broadcast %cst_28 : f32 to vector<128x256xf32>
    %49 = arith.maximumf %47, %48 : vector<128x256xf32>
    %cst_29 = arith.constant dense<0.000000e+00> : vector<128xf32>
    %50 = vector.multi_reduction <add>, %49, %cst_29 [1] : vector<128x256xf32> to vector<128xf32>
    %51 = vector.shape_cast %50 : vector<128xf32> to vector<128x1xf32>
    %cst_30 = arith.constant 3.906250e-03 : f32
    %52 = vector.broadcast %cst_30 : f32 to vector<128x1xf32>
    %53 = arith.mulf %51, %52 : vector<128x1xf32>
    %54 = tpu.transpose %53, [1, 0] : vector<128x1xf32> -> vector<1x128xf32>
    %55 = vector.shape_cast %54 : vector<1x128xf32> to vector<1x1x128xf32>
    %c0_31 = arith.constant 0 : index
    %c0_32 = arith.constant 0 : index
    %c0_33 = arith.constant 0 : index
    %56 = vector.load %arg4[%c0_31, %c0_32, %c0_33] : memref<1x1x128xf32, #tpu.memory_space<vmem>>, vector<1x1x128xf32>
    tpu.vector_store %arg4[%c0_31, %c0_32, %c0_33], %55 {strides = array<i32>} : memref<1x1x128xf32, #tpu.memory_space<vmem>>, vector<1x1x128xf32>,
    return
  }
  func.func @transform_0(%arg0: i32) -> (i32, i32, i32, i32) {
    %c0_i32 = arith.constant 0 : i32
    %c0_i32_0 = arith.constant 0 : i32
    %c0_i32_1 = arith.constant 0 : i32
    %c0_i32_2 = arith.constant 0 : i32
    return %arg0, %c0_i32, %c0_i32_0, %c0_i32_1 : i32, i32, i32, i32
  }
  func.func @transform_1(%arg0: i32) -> (i32, i32) {
    %c0_i32 = arith.constant 0 : i32
    %c0_i32_0 = arith.constant 0 : i32
    %c0_i32_1 = arith.constant 0 : i32
    return %c0_i32, %c0_i32_0 : i32, i32
  }
  func.func @transform_2(%arg0: i32) -> (i32, i32) {
    %c0_i32 = arith.constant 0 : i32
    %c0_i32_0 = arith.constant 0 : i32
    %c0_i32_1 = arith.constant 0 : i32
    return %c0_i32, %c0_i32_0 : i32, i32
  }
  func.func @transform_3(%arg0: i32) -> (i32, i32, i32) {
    %c0_i32 = arith.constant 0 : i32
    %c0_i32_0 = arith.constant 0 : i32
    %c0_i32_1 = arith.constant 0 : i32
    return %arg0, %c0_i32, %c0_i32_0 : i32, i32, i32
  }
}

</mosaic_0001>

<bundles_post_ra>
// kernel: tpu_custom_call.1
= control target key start
LH: loop header
LB: loop body
LE: loop exit
PB: predicated region body
PF: predicated region fallthrough
CT: control target
= control target key end

     0   :  { %8 = vsyncpa [#allocation5], 0  ;;  %s5283_s0 = inlined_call_operand.hbm [shape: f32[4,4,16,16], index: 0, kind: input, shape index: {}]   ;;  %s5284_s1 = inlined_call_operand.vmem [shape: bf16[128,36], index: 1, kind: input, shape index: {}]   ;;  %s5285_s2 = inlined_call_operand.vmem [shape: f32[128,1], index: 2, kind: input, shape index: {}]   ;;  %s5286_s3 = inlined_call_operand.hbm [shape: f32[4,1,128], index: 3, kind: output, shape index: {}]  }
   0x1   :  { %10 = vsyncpa [#allocation5 + $0x1], 0 }
   0x2   :  { %11 = vsyncpa [#allocation6], 0 }
   0x3   :  { %13 = vsyncpa [#allocation6 + $0x1], 0  ;;  %s3398_s12 = smov 0   ;;  %s3400_s13 = smov 0  }
   0x4   :  { %s3402_s14 = smov 0   ;;  %s3404_s15 = smov 0  }
   0x5 LB: > { %s3419_s16 = sadd.s32 4294967295, %s3360_s15   ;;  %s2676_s17 = sadd.s32 4294967294, %s3360_s15   ;;  %s3360_s15 = sphi %s3404_s15, %s5395_s15   ;;  %s3356_s14 = sphi %s3402_s14, %s5394_s14   ;;  %s3352_s13 = sphi %s3400_s13, %s5393_s13   ;;  %s3348_s12 = sphi %s3398_s12, %s5392_s12  }
   0x6   : > { %s3423_s18 = sadd.s32 1, %s3360_s15   ;;  %s26_s19 = sadd.s32 1, %s3356_s14 }
   0x7   : > { %s23_s20 = ssub.s32 %s3360_s15, %s3423_s18  ;;  %p33_p0 = scmp.ne.s32.totalorder %s3356_s14, %s3352_s13 }
   0x8   : > { %p24_p1 = scmp.eq.s32.totalorder %s23_s20, 0  ;;  %p34_p2 = scmp.eq.s32.totalorder %s3360_s15, 0 }
   0x9   : > { %p39_p3 = scmp.ne.s32.totalorder %s3352_s13, %s3348_s12  ;;  %p40_p4 = scmp.eq.s32.totalorder %s3419_s16, 0 }
   0xa   : > { %s3435_s21 = scalar_select %p24_p1, %s3356_s14, %s26_s19  }
   0xb   : > { %p3437_p5 = por %p34_p2, %p33_p0  ;;  %p3441_p6 = por %p40_p4, %p39_p3 }
   0xc   : > { %p105_p7 = scmp.eq.s32.totalorder %s3419_s16, 3  ;;  %p111_p8 = scmp.eq.s32.totalorder %s2676_s17, 3 }
   0xd   : > { %p2781_p9 = scmp.lt.s32.totalorder %s3360_s15, 4  ;;  %s137_s26 = sand.u32 1, %s3356_s14  }
   0xe   : > { %p3447_p10 = por %p105_p7, %p33_p0  ;;  %p3451_p11 = por %p111_p8, %p39_p3 }
   0xf   : > { %s2750_s27 = sshll.u32 %s3360_s15, 6  ;;  %s2679_s28 = sshll.u32 %s137_s26, 6 }
  0x10   : > { %s146_s4 = scalar_lea.hbm %s5283_s0, %s2750_s27  ;;  %s141_s6 = scalar_lea.vmem [#allocation4], %s2679_s28 }
  0x11   : > { %s147_s5 = sshll.u32 %s146_s4, 4  ;;  %s149_s7 = sshll.u32 %s141_s6, 4  ;;  %s148_s5 = int_to_ptr.hbm [resolvable:$true] %s147_s5  ;;  %s150_s7 = int_to_ptr.vmem [resolvable:$true] %s149_s7 }
  0x12   : > { %p3462_p12 = pnand %p2781_p9, %p3437_p5  ;;  %p2682_p13 = scmp.ge.s32.totalorder %s3360_s15, 1 }
  0x13   : > { %p157_p0 = scmp.lt.s32.totalorder %s3360_s15, 5  ;;  %s138_s9 = scalar_lea.sflag [#allocation5], %s137_s26 }
  0x14   : > { %s3264_s10 = sshra.s32 %s148_s5, 4  ;;  %p3268_p2 = pneg %p3462_p12  ;;  %s3265_s10 = int_to_ptr.hbm [resolvable:$true] %s3264_s10 }
  0x15   : > { %s3266_s11 = scalar_lea.hbm %s3265_s10, 64  ;;  %s3271_s20 = scalar_lea.hbm %s5283_s0, 256 }
  0x16   : > { %p3267_p1 = scmp.ne.s32.totalorder %s3265_s10, %s3266_s11  ;;  %p3272_p5 = scmp.lt.s32.totalorder %s3265_s10, %s5283_s0 }
  0x17   : > { %p3273_p7 = scmp.lt.s32.totalorder %s3271_s20, %s3266_s11 }
  0x18   : > { %p3269_p3 = pnand %p3268_p2, %p3267_p1 }
  0x19   : > { %p3274_p8 = por %p3273_p7, %p3272_p5 }
  0x1a   : > { %p3270_p4 = pneg %p3269_p3 }
  0x1c   : > { %p3275_p9 = pnand %p3274_p8, %p3270_p4 }
  0x1e   : > { %3278 = shalt.err (!%p3275_p9)
}
  0x1f   : > { %s3362_s26 = smov 128   ;;  %s3363_s28 = smov 8  }
  0x20   : > { %2776 = dma.hbm_to_vmem [thread:$0]  (!%p3462_p12), %s148_s5, 1024, %s150_s7, %s138_s9, %s3362_s26, %s3362_s26, %s3363_s28  }
  0x21   : > { %p158_p1 = pnand %p2682_p13, %p157_p0 }
  0x23   : > { %161 = sbr.rel (%p158_p1) target bundleno = 1009 (0x3f1), region = 32 }
  0x28   : > { %s3483_s29 = sand.u32 1, %s3352_s13  }
  0x29   : > { %s2683_s30 = sshll.u32 %s3483_s29, 6  ;;  %s164_s4 = scalar_lea.sflag [#allocation5], %s3483_s29 }
  0x2a   : > { %s167_s6 = scalar_lea.vmem [#allocation4], %s2683_s30 }
  0x2b   : > { %3339 = dma.done.wait (%p3441_p6), %s164_s4, 1024  }
  0x2c   : > { %3341 = vsyncadd (%p3441_p6), %s164_s4, 4294966272  ;;  %vm191_vm0 = vcmask 146432   ;;  %v3364_v0 = vmov 0.0   ;;  %v207_v1 = vld [vmem:[%s167_s6 + $0x10] sm:$0xff]  ;;  %v205_v2 = vld [vmem:[%s167_s6] sm:$0xff]  ;;  %s3365_s5 = smov 1  }
  0x2d   : > { %199 = vst.msk [vmem:[#allocation2 + $0x30] sm:$0xff] %vm191_vm0, %v3364_v0  ;;  %225 = vrot.lane.b32.xlu1 %v207_v1, %s3365_s5  ;;  %221 = vrot.lane.b32.xlu0 %v205_v2, %s3365_s5  ;;  %v209_v3 = vld [vmem:[%s167_s6 + $0x20] sm:$0xff]  ;;  %v208_v4 = vld [vmem:[%s167_s6 + $0x18] sm:$0xff]  ;;  %vm194_vm1 = vcmask 140288   ;;  %vm245_vm2 = vcmask 138248   ;;  %s3366_s23 = smov 127  }
  0x2e   : > { %200 = vst.msk [vmem:[#allocation2 + $0x38] sm:$0xff] %vm191_vm0, %v3364_v0  ;;  %229 = vrot.lane.b32.xlu2 %v209_v3, %s3365_s5  ;;  %v206_v5 = vld [vmem:[%s167_s6 + $0x8] sm:$0xff]  ;;  %v212_v7 = vld [vmem:[%s167_s6 + $0x38] sm:$0xff]  ;;  %v211_v8 = vld [vmem:[%s167_s6 + $0x30] sm:$0xff]  ;;  %v3367_v26 = vmov 1983009808  }
  0x2f   : > { %192 = vst.msk [vmem:[#allocation2] sm:$0xff] %vm191_vm0, %v3364_v0  ;;  %v210_v6 = vld [vmem:[%s167_s6 + $0x28] sm:$0xff]  ;;  %v272_v27 = vunpack.c.l.s4 %v3367_v26  ;;  %s3368_s7 = smov 126   ;;  %vm889_vm3 = vcmask 1046528   ;;  %vm267_vm4 = vcmask 1047556   ;;  %vm1524_vm5 = vcmask 1045504  }
  0x30   : > { %193 = vst.msk [vmem:[#allocation2 + $0x8] sm:$0xff] %vm191_vm0, %v3364_v0  ;;  %v3369_v48 = vmov 1934713408   ;;  %s3370_s8 = smov 64   ;;  %s3371_s9 = smov 96   ;;  %vm435_vm6 = vcmask 130048  }
  0x31   : > { %196 = vst.msk [vmem:[#allocation2 + $0x18] sm:$0xff] %vm191_vm0, %v3364_v0  ;;  %v3531_v32 = vunpack.c.0.s8 %v272_v27  ;;  %v296_v49 = vunpack.c.l.s4 %v3369_v48  ;;  %s3372_s10 = smov 32   ;;  %s3373_s11 = smov 16   ;;  %vm437_vm7 = vcmask 261120   ;;  %vm439_vm8 = vcmask 392192  }
  0x32   : > { %197 = vst.msk [vmem:[#allocation2 + $0x20] sm:$0xff] %vm191_vm0, %v3364_v0  ;;  %s3374_s17 = smov 48   ;;  %s3375_s19 = smov 80   ;;  %vm441_vm9 = vcmask 523264   ;;  %vm443_vm10 = vcmask 654336   ;;  %vm445_vm11 = vcmask 785408  }
  0x33   : > { %202 = vst.msk [vmem:[#allocation2 + $0x48] sm:$0xff] %vm191_vm0, %v3364_v0  ;;  %v3585_v63 = vunpack.c.0.s8 %v296_v49  ;;  %s3376_s20 = smov 112   ;;  %vm447_vm12 = vcmask 916480   ;;  %vm2363_vm13 = vcmask 1041408   ;;  %vm2338_vm14 = vcmask 293888   ;;  %s189_s22 = scalar_lea.vmem [#allocation7], %s3483_s29 }
  0x34   : > { %203 = vst.msk [vmem:[#allocation2 + $0x50] sm:$0xff] %vm191_vm0, %v3364_v0  ;;  %s2608_s27 = sshll.u32 %s189_s22, 4  ;;  %s2598_s28 = scalar_lea.sflag [#allocation6], %s3483_s29  ;;  %s2609_s27 = int_to_ptr.vmem [resolvable:$true] %s2608_s27 }
  0x35   : > { %227 = vrot.lane.b32.xlu1 %v208_v4, %s3365_s5  ;;  %223 = vrot.lane.b32.xlu0 %v206_v5, %s3365_s5  ;;  %201 = vst.msk [vmem:[#allocation2 + $0x40] sm:$0x3] %vm194_vm1, %v3364_v0 }
  0x36   : > { %231 = vrot.lane.b32.xlu2 %v210_v6, %s3365_s5  ;;  %195 = vst.msk [vmem:[#allocation2 + $0x10] sm:$0x3] %vm194_vm1, %v3364_v0 }
  0x37   : > { %198 = vst.msk [vmem:[#allocation2 + $0x28] sm:$0x3] %vm194_vm1, %v3364_v0 }
  0x38   : > { %204 = vst.msk [vmem:[#allocation2 + $0x58] sm:$0x3] %vm194_vm1, %v3364_v0 }
  0x3d   : > { %235 = vrot.lane.b32.xlu1 %v212_v7, %s3365_s5  ;;  %233 = vrot.lane.b32.xlu0 %v211_v8, %s3365_s5 }
  0x88   : > { %v230_v9 = vpop.permute.xlu2 %229 }
  0x89   : > { %250 = vst.msk [vmem:[#allocation2 + $0x31] sm:$0xff] %vm245_vm2, %v230_v9 }
  0x90   : > { %v232_v10 = vpop.permute.xlu2 %231  ;;  %v3493_v11 = vld [vmem:[#allocation2 + $0x30] sm:$0xff] }
  0x91   : > { %251 = vst.msk [vmem:[#allocation2 + $0x39] sm:$0xff] %vm245_vm2, %v232_v10  ;;  %v900_v33 = vrot.slane %v3493_v11, 1  ;;  %v266_v36 = vrot.slane %v3493_v11, 4 }
  0x98   : > { %v3495_v12 = vld [vmem:[#allocation2 + $0x38] sm:$0xff]  ;;  %v3524_v28 = vld [vmem:[#allocation2 + $0x40] sm:$0x3] }
  0x99   : > { %v2841_v13 = vpack.i.bf16 %v3495_v12, %v3493_v11  ;;  %v901_v34 = vrot.slane %v3495_v12, 1  ;;  %v903_v35 = vrot.slane %v3524_v28, 1  ;;  %v323_v61 = vrot.slane %v3495_v12, 4 }
  0x9b   : > { %2842 = vrot.lane.b32.xlu2 %v2841_v13, %s3366_s23  ;;  %v3556_v50 = vsel %vm889_vm3, %v900_v33, %v901_v34  ;;  %v3559_v51 = vsel %vm889_vm3, %v901_v34, %v903_v35 }
  0x9c   : > { %v3579_v58 = vpack.i.bf16 %v3559_v51, %v3556_v50 }
  0x9f   : > { %v226_v14 = vpop.permute.xlu1 %225  ;;  %v222_v15 = vpop.permute.xlu0 %221 }
  0xa0   : > { %248 = vst.msk [vmem:[#allocation2 + $0x19] sm:$0xff] %vm245_vm2, %v226_v14 }
  0xa1   : > { %246 = vst.msk [vmem:[#allocation2 + $0x1] sm:$0xff] %vm245_vm2, %v222_v15 }
  0xa7   : > { %v228_v16 = vpop.permute.xlu1 %227  ;;  %v224_v17 = vpop.permute.xlu0 %223  ;;  %v3504_v20 = vld [vmem:[#allocation2 + $0x18] sm:$0xff] }
  0xa8   : > { %249 = vst.msk [vmem:[#allocation2 + $0x21] sm:$0xff] %vm245_vm2, %v228_v16  ;;  %v3513_v23 = vld [vmem:[#allocation2] sm:$0xff]  ;;  %v895_v46 = vrot.slane %v3504_v20, 1  ;;  %v281_v62 = vrot.slane %v3504_v20, 4 }
  0xa9   : > { %247 = vst.msk [vmem:[#allocation2 + $0x9] sm:$0xff] %vm245_vm2, %v224_v17  ;;  %v269_v29 = vrot.slane %v3513_v23, 4  ;;  %v890_v45 = vrot.slane %v3513_v23, 1  ;;  %v268_v52 = vsel %vm267_vm4, %v266_v36, %v3513_v23 }
  0xaa   : > { %v3588_v1 = vperm.slane %v268_v52, %v3531_v32 }
  0xab   : > { %v270_v41 = vsel %vm267_vm4, %v3493_v11, %v269_v29 }
  0xac   : > { %v278_v47 = vperm.slane %v270_v41, %v3531_v32 }
  0xae   : > { %v305_v0 = vrot.slane %v278_v47, 4 }
  0xaf   : > { %v236_v18 = vpop.permute.xlu1 %235  ;;  %v234_v19 = vpop.permute.xlu0 %233  ;;  %v3506_v21 = vld [vmem:[#allocation2 + $0x20] sm:$0xff]  ;;  %v3527_v30 = vld [vmem:[#allocation2 + $0x28] sm:$0x3] }
  0xb0   : > { %253 = vst.msk [vmem:[#allocation2 + $0x51] sm:$0xff] %vm245_vm2, %v236_v18  ;;  %v3511_v22 = vpack.i.bf16 %v3506_v21, %v3504_v20  ;;  %v3515_v24 = vld [vmem:[#allocation2 + $0x8] sm:$0xff]  ;;  %v3529_v31 = vld [vmem:[#allocation2 + $0x10] sm:$0x3]  ;;  %v896_v39 = vrot.slane %v3506_v21, 1  ;;  %v898_v40 = vrot.slane %v3527_v30, 1 }
  0xb1   : > { %252 = vst.msk [vmem:[#allocation2 + $0x49] sm:$0xff] %vm245_vm2, %v234_v19  ;;  %v2851_v25 = vpack.i.bf16 %v3515_v24, %v3513_v23  ;;  %v891_v43 = vrot.slane %v3515_v24, 1  ;;  %v893_v44 = vrot.slane %v3529_v31, 1  ;;  %v325_v6 = vrot.slane %v3515_v24, 4 }
  0xb2   : > { %2837 = vrot.lane.b32.xlu1 %v3511_v22, %s3366_s23  ;;  %v3570_v55 = vsel %vm889_vm3, %v895_v46, %v896_v39  ;;  %v3573_v56 = vsel %vm889_vm3, %v896_v39, %v898_v40  ;;  %v337_v7 = vrot.slane %v3506_v21, 4  ;;  %v293_v18 = vrot.slane %v3588_v1, 4 }
  0xb3   : > { %2852 = vrot.lane.b32.xlu2 %v2851_v25, %s3368_s7  ;;  %2832 = vrot.lane.b32.xlu0 %v2851_v25, %s3366_s23  ;;  %v3564_v53 = vsel %vm889_vm3, %v890_v45, %v891_v43  ;;  %v3567_v54 = vsel %vm889_vm3, %v891_v43, %v893_v44  ;;  %v3594_v3 = vpack.i.bf16 %v3573_v56, %v3570_v55 }
  0xb4   : > { %v2871_v2 = vpack.i.bf16 %v3567_v54, %v3564_v53  ;;  %v326_v15 = vsel %vm267_vm4, %v3495_v12, %v325_v6 }
  0xb5   : > { %v334_v25 = vperm.slane %v326_v15, %v3531_v32 }
  0xb7   : > { %v3575_v57 = vld [vmem:[#allocation2 + $0x58] sm:$0x3]  ;;  %v361_v39 = vrot.slane %v334_v25, 4 }
  0xb8   : > { %v3537_v37 = vld [vmem:[#allocation2 + $0x48] sm:$0xff]  ;;  %v3539_v38 = vld [vmem:[#allocation2 + $0x50] sm:$0xff]  ;;  %v908_v4 = vrot.slane %v3575_v57, 1 }
  0xb9   : > { %v2866_v42 = vpack.i.bf16 %v3539_v38, %v3537_v37  ;;  %v905_v59 = vrot.slane %v3537_v37, 1  ;;  %v906_v60 = vrot.slane %v3539_v38, 1  ;;  %v282_v5 = vsel %vm267_vm4, %v3537_v37, %v281_v62 }
  0xba   : > { %2862 = vrot.lane.b32.xlu1 %v2841_v13, %s3368_s7  ;;  %v279_v8 = vrot.slane %v3537_v37, 4  ;;  %v290_v10 = vperm.slane %v282_v5, %v3531_v32  ;;  %v324_v13 = vsel %vm267_vm4, %v323_v61, %v3515_v24  ;;  %v335_v14 = vrot.slane %v3539_v38, 4 }
  0xbb   : > { %2867 = vrot.lane.b32.xlu2 %v2866_v42, %s3368_s7  ;;  %2847 = vrot.lane.b32.xlu0 %v2866_v42, %s3366_s23  ;;  %v3605_v9 = vsel %vm889_vm3, %v905_v59, %v906_v60  ;;  %v338_v16 = vsel %vm267_vm4, %v3539_v38, %v337_v7  ;;  %v3625_v27 = vsel %vm889_vm3, %v906_v60, %v908_v4 }
  0xbc   : > { %v280_v17 = vsel %vm267_vm4, %v279_v8, %v3504_v20  ;;  %v303_v19 = vrot.slane %v290_v10, 4  ;;  %v346_v26 = vperm.slane %v338_v16, %v3531_v32  ;;  %v3631_v33 = vperm.slane %v324_v13, %v3531_v32 }
  0xbd   : > { %v3628_v29 = vperm.slane %v280_v17, %v3531_v32  ;;  %v336_v34 = vsel %vm267_vm4, %v335_v14, %v3506_v21  ;;  %v2886_v48 = vpack.i.bf16 %v3625_v27, %v3605_v9 }
  0xbe   : > { %v304_v35 = vsel %vm267_vm4, %v303_v19, %v278_v47  ;;  %v359_v36 = vrot.slane %v346_v26, 4  ;;  %v3637_v40 = vperm.slane %v336_v34, %v3531_v32  ;;  %v349_v44 = vrot.slane %v3631_v33, 4 }
  0xbf   : > { %v3640_v41 = vperm.slane %v304_v35, %v3585_v63  ;;  %v294_v43 = vsel %vm267_vm4, %v3628_v29, %v293_v18  ;;  %v362_v46 = vsel %vm267_vm4, %v346_v26, %v361_v39  ;;  %v1533_v26 = vrot.slane %v3527_v30, 2 }
  0xc0   : > { %v360_v45 = vsel %vm267_vm4, %v359_v36, %v334_v25  ;;  %v3651_v47 = vperm.slane %v294_v43, %v3585_v63  ;;  %v3659_v52 = vperm.slane %v362_v46, %v3585_v63  ;;  %v350_v59 = vsel %vm267_vm4, %v3637_v40, %v349_v44 }
  0xc1   : > { %v3656_v49 = vperm.slane %v360_v45, %v3585_v63  ;;  %v3665_v60 = vperm.slane %v350_v59, %v3585_v63  ;;  %v319_v61 = vrot.slane %v3640_v41, 4  ;;  %v1531_v25 = vrot.slane %v3506_v21, 2 }
  0xc2   : > { %2882 = vrot.lane.b32.xlu1 %v3579_v58, %s3366_s23  ;;  %v317_v6 = vrot.slane %v3651_v47, 4  ;;  %v377_v15 = vrot.slane %v3659_v52, 4  ;;  %v1540_v34 = vrot.slane %v3537_v37, 2  ;;  %v1541_v35 = vrot.slane %v3539_v38, 2 }
  0xc3   : > { %2857 = vrot.lane.b32.xlu0 %v3511_v22, %s3368_s7  ;;  %2872 = vrot.lane.b32.xlu2 %v2871_v2, %s3366_s23  ;;  %v306_v22 = vsel %vm267_vm4, %v290_v10, %v305_v0  ;;  %v2956_v62 = vpack.i.bf16 %v3656_v49, %v3640_v41  ;;  %v375_v4 = vrot.slane %v3656_v49, 4  ;;  %v3679_v5 = vsel %vm267_vm4, 0.0, %v319_v61 }
  0xc4   : > { %v3643_v42 = vperm.slane %v306_v22, %v3585_v63  ;;  %v373_v8 = vrot.slane %v3665_v60, 4  ;;  %v3690_v14 = vsel %vm267_vm4, 0.0, %v317_v6  ;;  %v3702_v19 = vsel %vm267_vm4, 0.0, %v377_v15 }
  0xc5   : > { %v3683_v7 = vsel %vm267_vm4, 0.0, %v375_v4  ;;  %v1543_v36 = vrot.slane %v3575_v57, 2  ;;  %v1530_v21 = vrot.slane %v3504_v20, 2  ;;  %v1535_v30 = vrot.slane %v3493_v11, 2 }
  0xc6   : > { %v2961_v0 = vpack.i.bf16 %v3659_v52, %v3643_v42  ;;  %v321_v10 = vrot.slane %v3643_v42, 4  ;;  %v2976_v13 = vpack.i.bf16 %v3683_v7, %v3679_v5  ;;  %v3694_v16 = vsel %vm267_vm4, 0.0, %v373_v8 }
  0xc7   : > { %v2971_v18 = vpack.i.bf16 %v3694_v16, %v3690_v14  ;;  %v1536_v39 = vrot.slane %v3495_v12, 2  ;;  %v1538_v43 = vrot.slane %v3524_v28, 2  ;;  %v3721_v37 = vsel %vm1524_vm5, %v1530_v21, %v1531_v25 }
  0xc8   : > { %v3697_v17 = vsel %vm267_vm4, 0.0, %v321_v10  ;;  %v3724_v38 = vsel %vm1524_vm5, %v1531_v25, %v1533_v26  ;;  %v3727_v57 = vsel %vm1524_vm5, %v1540_v34, %v1541_v35  ;;  %v1526_v44 = vrot.slane %v3515_v24, 2 }
  0xc9   : > { %v2981_v22 = vpack.i.bf16 %v3702_v19, %v3697_v17  ;;  %v2916_v20 = vpack.i.bf16 %v3724_v38, %v3721_v37  ;;  %v3735_v11 = vsel %vm1524_vm5, %v1535_v30, %v1536_v39  ;;  %v3738_v12 = vsel %vm1524_vm5, %v1536_v39, %v1538_v43 }
  0xca   : > { %2892 = vrot.lane.b32.xlu1 %v2871_v2, %s3368_s7  ;;  %v2951_v2 = vpack.i.bf16 %v3665_v60, %v3651_v47  ;;  %v1528_v45 = vrot.slane %v3529_v31, 2  ;;  %v1525_v46 = vrot.slane %v3513_v23, 2  ;;  %v291_v61 = vrot.slane %v3628_v29, 4 }
  0xcb   : > { %2877 = vrot.lane.b32.xlu0 %v3594_v3, %s3366_s23  ;;  %2887 = vrot.lane.b32.xlu2 %v2886_v48, %s3366_s23  ;;  %v347_v4 = vrot.slane %v3637_v40, 4  ;;  %v974_v31 = vrot.slane %v3559_v51, 4  ;;  %v918_v40 = vrot.slane %v3556_v50, 4  ;;  %v920_v10 = vrot.slane %v3564_v53, 4 }
  0xcc   : > { %v1529_v59 = vsel %vm1524_vm5, %v1526_v44, %v1528_v45  ;;  %v292_v24 = vsel %vm267_vm4, %v291_v61, %v3588_v1  ;;  %v1553_v15 = vrot.slane %v3735_v11, 4  ;;  %v932_v25 = vrot.slane %v3570_v55, 4 }
  0xcd   : > { %v348_v23 = vsel %vm267_vm4, %v347_v4, %v3631_v33  ;;  %v3763_v8 = vperm.slane %v292_v24, %v3585_v63  ;;  %v975_v1 = vsel %vm267_vm4, %v974_v31, %v3567_v54  ;;  %v1609_v33 = vrot.slane %v3738_v12, 4 }
  0xce   : > { %v3766_v29 = vperm.slane %v348_v23, %v3585_v63  ;;  %v988_v26 = vrot.slane %v3573_v56, 4  ;;  %v1567_v34 = vrot.slane %v3721_v37, 4  ;;  %v976_v21 = vrot.slane %v3567_v54, 4 }
  0xcf   : > { %v919_v30 = vsel %vm267_vm4, %v918_v40, %v3564_v53  ;;  %v933_v39 = vsel %vm267_vm4, %v3605_v9, %v932_v25  ;;  %v1623_v43 = vrot.slane %v3724_v38, 4  ;;  %v921_v53 = vsel %vm267_vm4, %v3556_v50, %v920_v10 }
  0xd0   : > { %v989_v54 = vsel %vm267_vm4, %v3625_v27, %v988_v26  ;;  %v930_v49 = vrot.slane %v3605_v9, 4  ;;  %v941_v61 = vperm.slane %v933_v39, %v3531_v32  ;;  %v3808_v50 = vperm.slane %v919_v30, %v3531_v32 }
  0xd1   : > { %v929_v4 = vperm.slane %v921_v53, %v3531_v32  ;;  %v1610_v23 = vsel %vm267_vm4, %v1609_v33, %v1529_v59  ;;  %v977_v9 = vsel %vm267_vm4, %v3559_v51, %v976_v21  ;;  %v1565_v40 = vrot.slane %v3727_v57, 4 }
  0xd2   : > { %2907 = vrot.lane.b32.xlu1 %v2886_v48, %s3368_s7  ;;  %v1527_v48 = vsel %vm1524_vm5, %v1525_v46, %v1526_v44  ;;  %v1611_v44 = vrot.slane %v1529_v59, 4  ;;  %v954_v51 = vrot.slane %v941_v61, 4  ;;  %v985_v42 = vperm.slane %v977_v9, %v3531_v32 }
  0xd3   : > { %2902 = vrot.lane.b32.xlu0 %v3579_v58, %s3368_s7  ;;  %2897 = vrot.lane.b32.xlu2 %v3594_v3, %s3368_s7  ;;  %v3730_v58 = vsel %vm1524_vm5, %v1541_v35, %v1543_v36  ;;  %v2921_v3 = vpack.i.bf16 %v3738_v12, %v3735_v11  ;;  %v2926_v6 = vpack.i.bf16 %v1529_v59, %v1527_v48  ;;  %v315_v35 = vrot.slane %v3763_v8, 4 }
  0xd4   : > { %v2911_v28 = vpack.i.bf16 %v3730_v58, %v3727_v57  ;;  %v371_v36 = vrot.slane %v3766_v29, 4  ;;  %v1555_v45 = vrot.slane %v1527_v48, 4  ;;  %v1624_v41 = vsel %vm267_vm4, %v3730_v58, %v1623_v43 }
  0xd5   : > { %v1621_v24 = vrot.slane %v3730_v58, 4  ;;  %v1632_v31 = vperm.slane %v1624_v41, %v3531_v32  ;;  %v1612_v25 = vsel %vm267_vm4, %v3738_v12, %v1611_v44  ;;  %v1554_v26 = vsel %vm267_vm4, %v1553_v15, %v1527_v48 }
  0xd6   : > { %v372_v46 = vsel %vm267_vm4, 0.0, %v371_v36  ;;  %v931_v58 = vsel %vm267_vm4, %v930_v49, %v3570_v55  ;;  %v3839_v12 = vperm.slane %v1610_v23, %v3531_v32  ;;  %v1566_v15 = vsel %vm267_vm4, %v1565_v40, %v3721_v37 }
  0xd7   : > { %v1645_v48 = vrot.slane %v1632_v31, 4  ;;  %v1622_v47 = vsel %vm267_vm4, %v1621_v24, %v3724_v38  ;;  %v3851_v33 = vperm.slane %v1554_v26, %v3531_v32  ;;  %v1012_v36 = vrot.slane %v985_v42, 4 }
  0xd8   : > { %v1628_v17 = vperm.slane %v1622_v47, %v3531_v32 }
  0xda   : > { %2917 = vrot.lane.b32.xlu1 %v2916_v20, %s3368_s7  ;;  %v1633_v47 = vrot.slane %v1628_v17, 4 }
  0xdb   : > { %2912 = vrot.lane.b32.xlu0 %v2911_v28, %s3368_s7  ;;  %2922 = vrot.lane.b32.xlu2 %v2921_v3, %s3368_s7 }
  0xe2   : > { %2932 = vrot.lane.b32.xlu1 %v2911_v28, %s3366_s23  ;;  %v1568_v28 = vsel %vm267_vm4, %v3727_v57, %v1567_v34  ;;  %v955_v34 = vsel %vm267_vm4, %v954_v51, %v929_v4 }
  0xe3   : > { %2927 = vrot.lane.b32.xlu0 %v2926_v6, %s3368_s7  ;;  %2937 = vrot.lane.b32.xlu2 %v2916_v20, %s3366_s23  ;;  %v3792_v20 = vperm.slane %v975_v1, %v3531_v32  ;;  %v1556_v1 = vsel %vm267_vm4, %v3735_v11, %v1555_v45  ;;  %v956_v11 = vrot.slane %v929_v4, 4  ;;  %v1579_v4 = vrot.slane %v3851_v33, 4 }
  0xe4   : > { %v1564_v55 = vperm.slane %v1556_v1, %v3531_v32 }
  0xe5   : > { %v957_v60 = vsel %vm267_vm4, %v941_v61, %v956_v11  ;;  %v1000_v38 = vrot.slane %v3792_v20, 4 }
  0xe6   : > { %v3859_v39 = vperm.slane %v957_v60, %v3585_v63  ;;  %v1591_v37 = vrot.slane %v1564_v55, 4 }
  0xea   : > { %2947 = vrot.lane.b32.xlu1 %v2926_v6, %s3366_s23  ;;  %v1576_v6 = vperm.slane %v1568_v28, %v3531_v32  ;;  %v3864_v28 = vperm.slane %v955_v34, %v3585_v63 }
  0xeb   : > { %2942 = vrot.lane.b32.xlu0 %v2921_v3, %s3366_s23  ;;  %2957 = vrot.lane.b32.xlu2 %v2956_v62, %s3370_s8  ;;  %v986_v3 = vrot.slane %v3625_v27, 4  ;;  %v316_v62 = vsel %vm267_vm4, 0.0, %v315_v35  ;;  %v997_v27 = vperm.slane %v989_v54, %v3531_v32  ;;  %v944_v35 = vrot.slane %v3808_v50, 4  ;;  %s3314_s23 = scalar_lea.hbm %s5286_s3, 4 }
  0xec   : > { %v2966_v10 = vpack.i.bf16 %v372_v46, %v316_v62  ;;  %v1592_v49 = vsel %vm267_vm4, %v1576_v6, %v1591_v37 }
  0xed   : > { %v987_v57 = vsel %vm267_vm4, %v986_v3, %v3573_v56  ;;  %v1010_v52 = vrot.slane %v997_v27, 4  ;;  %v1620_v56 = vperm.slane %v1612_v25, %v3531_v32  ;;  %v1013_v53 = vsel %vm267_vm4, %v997_v27, %v1012_v36 }
  0xee   : > { %v993_v59 = vperm.slane %v987_v57, %v3531_v32  ;;  %v3888_v16 = vperm.slane %v1592_v49, %v3585_v63  ;;  %v3894_v46 = vperm.slane %v1013_v53, %v3585_v63 }
  0xef   : > { %v1011_v21 = vsel %vm267_vm4, %v1010_v52, %v985_v42  ;;  %v1646_v43 = vsel %vm267_vm4, %v1645_v48, %v1620_v56  ;;  %v1647_v54 = vrot.slane %v1620_v56, 4 }
  0xf0   : > { %v1001_v44 = vsel %vm267_vm4, %v993_v59, %v1000_v38  ;;  %v3873_v45 = vperm.slane %v1011_v21, %v3585_v63  ;;  %v1652_v14 = vperm.slane %v1646_v43, %v3585_v63  ;;  %5311 = vst [vmem:[#allocation10_spill] sm:$0xff] %v3888_v16  ;;  %v998_v61 = vrot.slane %v993_v59, 4 }
  0xf1   : > { %v1648_v62 = vsel %vm267_vm4, %v1632_v31, %v1647_v54  ;;  %v1009_v7 = vperm.slane %v1001_v44, %v3585_v63  ;;  %v2996_v9 = vpack.i.bf16 %v3894_v46, %v3859_v39  ;;  %v970_v21 = vrot.slane %v3864_v28, 4 }
  0xf2   : > { %2962 = vrot.lane.b32.xlu1 %v2961_v0, %s3371_s9  ;;  %v1589_v0 = vrot.slane %v1576_v6, 4  ;;  %v2991_v27 = vpack.i.bf16 %v3873_v45, %v3864_v28  ;;  %v1635_v6 = vrot.slane %v3839_v12, 4  ;;  %v1661_v23 = vrot.slane %v1652_v14, 4 }
  0xf3   : > { %2952 = vrot.lane.b32.xlu0 %v2951_v2, %s3372_s10  ;;  %2967 = vrot.lane.b32.xlu2 %v2966_v10, %s3373_s11  ;;  %v937_v2 = vperm.slane %v931_v58, %v3531_v32  ;;  %v1024_v1 = vrot.slane %v1009_v7, 4  ;;  %v999_v57 = vsel %vm267_vm4, %v998_v61, %v3792_v20  ;;  %v1026_v38 = vrot.slane %v3873_v45, 4 }
  0xf4   : > { %v1590_v30 = vsel %vm267_vm4, %v1589_v0, %v1564_v55  ;;  %v1636_v25 = vsel %vm267_vm4, %v1628_v17, %v1635_v6  ;;  %v3914_v51 = vsel %vm267_vm4, 0.0, %v1661_v23  ;;  %v3935_v20 = vperm.slane %v999_v57, %v3585_v63 }
  0xf5   : > { %v945_v3 = vsel %vm267_vm4, %v937_v2, %v944_v35  ;;  %v1596_v41 = vperm.slane %v1590_v30, %v3585_v63  ;;  %5314 = vst [vmem:[#allocation13_spill] sm:$0xff] %v3914_v51  ;;  %v3925_v42 = vpop.permute.xlu2 %2842  ;;  %v1644_v0 = vperm.slane %v1636_v25, %v3585_v63  ;;  %v1634_v43 = vsel %vm267_vm4, %v1633_v47, %v3839_v12 }
  0xf6   : > { %v953_v5 = vperm.slane %v945_v3, %v3585_v63  ;;  %5316 = vst [vmem:[#allocation15_spill] sm:$0xff] %v3935_v20  ;;  %v1022_v36 = vrot.slane %v3935_v20, 4  ;;  %v971_v44 = vsel %vm267_vm4, 0.0, %v970_v21  ;;  %v1027_v45 = vsel %vm267_vm4, 0.0, %v1026_v38 }
  0xf7   : > { %v1605_v24 = vrot.slane %v1596_v41, 4  ;;  %v1659_v34 = vrot.slane %v1644_v0, 4  ;;  %v2844_v23 = vunpack.i.l.bf16 %v3925_v42 }
  0xf8   : > { %v2986_v31 = vpack.i.bf16 %v1009_v7, %v953_v5  ;;  %v968_v40 = vrot.slane %v953_v5, 4  ;;  %v1023_v3 = vsel %vm267_vm4, 0.0, %v1022_v36  ;;  %v1028_v5 = vrot.slane %v3894_v46, 4 }
  0xf9   : > { %v3911_v26 = vsel %vm267_vm4, 0.0, %v1605_v24  ;;  %v1660_v53 = vsel %vm267_vm4, 0.0, %v1659_v34  ;;  %v2845_v24 = vunpack.i.h.bf16 %v3925_v42 }
  0xfa   : > { %2972 = vrot.lane.b32.xlu1 %v2971_v18, %s3374_s17  ;;  %v3891_v18 = vperm.slane %v1648_v62, %v3585_v63  ;;  %5313 = vst [vmem:[#allocation12_spill] sm:$0xff] %v3911_v26  ;;  %v969_v55 = vsel %vm267_vm4, 0.0, %v968_v40  ;;  %v3021_v62 = vpack.i.bf16 %v1027_v45, %v971_v44  ;;  %v1029_v61 = vsel %vm267_vm4, 0.0, %v1028_v5 }
  0xfb   : > { %2977 = vrot.lane.b32.xlu0 %v2976_v13, %s3375_s19  ;;  %2982 = vrot.lane.b32.xlu2 %v2981_v22, %s3376_s20  ;;  %v1572_v13 = vperm.slane %v1566_v15, %v3531_v32  ;;  %v942_v22 = vrot.slane %v937_v2, 4  ;;  %v3006_v15 = vpack.i.bf16 %v1652_v14, %v1596_v41  ;;  %v972_v14 = vrot.slane %v3859_v39, 4 }
  0xfc   : > { %5312 = vst [vmem:[#allocation11_spill] sm:$0xff] %v3891_v18 }
  0xfd   : > { %v1580_v10 = vsel %vm267_vm4, %v1572_v13, %v1579_v4  ;;  %v943_v58 = vsel %vm267_vm4, %v942_v22, %v3808_v50  ;;  %v1025_v50 = vsel %vm267_vm4, 0.0, %v1024_v1  ;;  %v1577_v48 = vrot.slane %v1572_v13, 4 }
  0xfe   : > { %v1588_v52 = vperm.slane %v1580_v10, %v3585_v63  ;;  %v3932_v56 = vperm.slane %v943_v58, %v3585_v63  ;;  %v3016_v60 = vpack.i.bf16 %v1025_v50, %v969_v55  ;;  %v973_v22 = vsel %vm267_vm4, 0.0, %v972_v14 }
  0xff   : > { %v1578_v30 = vsel %vm267_vm4, %v1577_v48, %v3851_v33  ;;  %v3960_v33 = vperm.slane %v1634_v43, %v3585_v63  ;;  %v3026_v4 = vpack.i.bf16 %v1029_v61, %v973_v22  ;;  %v490_v55 = vrot.slane %v2844_v23, 4 }
 0x100   : > { %5315 = vst [vmem:[#allocation14_spill] sm:$0xff] %v3932_v56  ;;  %v3001_v2 = vpack.i.bf16 %v1644_v0, %v1588_v52  ;;  %v1603_v59 = vrot.slane %v1588_v52, 4  ;;  %v966_v35 = vrot.slane %v3932_v56, 4  ;;  %v3957_v41 = vperm.slane %v1578_v30, %v3585_v63 }
 0x101   : > { %5318 = vst [vmem:[#allocation17_spill] sm:$0xff] %v3960_v33  ;;  %v1657_v13 = vrot.slane %v3960_v33, 4  ;;  %v546_v0 = vrot.slane %v2845_v24, 4 }
 0x102   : > { %2992 = vrot.lane.b32.xlu1 %v2991_v27, %s3370_s8  ;;  %v1604_v54 = vsel %vm267_vm4, 0.0, %v1603_v59  ;;  %v967_v28 = vsel %vm267_vm4, 0.0, %v966_v35  ;;  %5317 = vst [vmem:[#allocation16_spill] sm:$0xff] %v3957_v41  ;;  %v1601_v7 = vrot.slane %v3957_v41, 4 }
 0x103   : > { %2997 = vrot.lane.b32.xlu0 %v2996_v9, %s3371_s9  ;;  %2987 = vrot.lane.b32.xlu2 %v2986_v31, %s3372_s10  ;;  %v3011_v12 = vpack.i.bf16 %v1023_v3, %v967_v28  ;;  %v3036_v49 = vpack.i.bf16 %v1660_v53, %v1604_v54  ;;  %v1658_v46 = vsel %vm267_vm4, 0.0, %v1657_v13 }
 0x104   : > { %v1602_v39 = vsel %vm267_vm4, 0.0, %v1601_v7 }
 0x105   : > { %v3031_v27 = vpack.i.bf16 %v1658_v46, %v1602_v39 }
 0x10a   : > { %3002 = vrot.lane.b32.xlu1 %v3001_v2, %s3372_s10 }
 0x10b   : > { %3017 = vrot.lane.b32.xlu0 %v3016_v60, %s3374_s17  ;;  %3007 = vrot.lane.b32.xlu2 %v3006_v15, %s3370_s8 }
 0x10d   : > { %v3948_v37 = vpop.permute.xlu2 %2852 }
 0x10e   : > { %v2855_v31 = vunpack.i.h.bf16 %v3948_v37  ;;  %v2854_v40 = vunpack.i.l.bf16 %v3948_v37 }
 0x110   : > { %v759_v59 = vrot.slane %v2855_v31, 4  ;;  %v703_v35 = vrot.slane %v2854_v40, 4 }
 0x112   : > { %3012 = vrot.lane.b32.xlu1 %v3011_v12, %s3373_s11 }
 0x113   : > { %3037 = vrot.lane.b32.xlu0 %v3036_v49, %s3374_s17  ;;  %3022 = vrot.lane.b32.xlu2 %v3021_v62, %s3375_s19 }
 0x115   : > { %v3969_v17 = vpop.permute.xlu2 %2867 }
 0x116   : > { %v2870_v25 = vunpack.i.h.bf16 %v3969_v17  ;;  %v2869_v58 = vunpack.i.l.bf16 %v3969_v17 }
 0x118   : > { %v3997_v36 = vrot.slane %v2870_v25, 4  ;;  %v4001_v21 = vrot.slane %v2869_v58, 4 }
 0x11a   : > { %3027 = vrot.lane.b32.xlu1 %v3026_v4, %s3376_s20 }
 0x11b   : > { %3032 = vrot.lane.b32.xlu2 %v3031_v27, %s3373_s11 }
 0x11d   : > { %v3977_v6 = vpop.permute.xlu2 %2872 }
 0x11e   : > { %v2875_v50 = vunpack.i.h.bf16 %v3977_v6  ;;  %v2874_v42 = vunpack.i.l.bf16 %v3977_v6 }
 0x120   : > { %v1187_v30 = vrot.slane %v2875_v50, 4  ;;  %v1131_v43 = vrot.slane %v2874_v42, 4 }
 0x124   : > { %v3981_v9 = vpop.permute.xlu1 %2837 }
 0x125   : > { %v2833_v10 = vpop.permute.xlu0 %2832  ;;  %v3985_v1 = vpop.permute.xlu2 %2887  ;;  %v2840_v48 = vunpack.i.h.bf16 %v3981_v9  ;;  %v2839_v47 = vunpack.i.l.bf16 %v3981_v9 }
 0x126   : > { %v2835_v57 = vunpack.i.h.bf16 %v2833_v10  ;;  %v2834_v52 = vunpack.i.l.bf16 %v2833_v10  ;;  %v2890_v34 = vunpack.i.h.bf16 %v3985_v1  ;;  %v2889_v44 = vunpack.i.l.bf16 %v3985_v1 }
 0x127   : > { %v560_v53 = vrot.slane %v2840_v48, 4  ;;  %v504_v28 = vrot.slane %v2839_v47, 4 }
 0x128   : > { %v548_v60 = vrot.slane %v2835_v57, 4  ;;  %v492_v2 = vrot.slane %v2834_v52, 4  ;;  %v547_v15 = vsel %vm267_vm4, %v546_v0, %v2835_v57  ;;  %v491_v38 = vsel %vm267_vm4, %v490_v55, %v2834_v52 }
 0x129   : > { %v4011_v3 = vperm.slane %v547_v15, %v3531_v32  ;;  %v4015_v12 = vperm.slane %v491_v38, %v3531_v32  ;;  %v4019_v49 = vrot.slane %v2890_v34, 4 }
 0x12a   : > { %v549_v37 = vsel %vm267_vm4, %v2845_v24, %v548_v60  ;;  %v493_v54 = vsel %vm267_vm4, %v2844_v23, %v492_v2  ;;  %v4033_v23 = vrot.slane %v2889_v44, 4 }
 0x12b   : > { %v4024_v13 = vperm.slane %v549_v37, %v3531_v32  ;;  %v4027_v22 = vperm.slane %v493_v54, %v3531_v32  ;;  %v572_v2 = vrot.slane %v4011_v3, 4 }
 0x12c   : > { %v2863_v45 = vpop.permute.xlu1 %2862 }
 0x12d   : > { %v2865_v62 = vunpack.i.h.bf16 %v2863_v45  ;;  %v2864_v14 = vunpack.i.l.bf16 %v2863_v45  ;;  %v2848_v5 = vpop.permute.xlu0 %2847  ;;  %v4021_v7 = vpop.permute.xlu2 %2897  ;;  %v584_v38 = vrot.slane %v4024_v13, 4 }
 0x12e   : > { %v2850_v61 = vunpack.i.h.bf16 %v2848_v5  ;;  %v2849_v39 = vunpack.i.l.bf16 %v2848_v5  ;;  %v5287_v54 = vunpack.i.h.bf16 %v4021_v7 }
 0x12f   : > { %v757_v46 = vrot.slane %v2865_v62, 4  ;;  %v701_v4 = vrot.slane %v2864_v14, 4  ;;  %v704_v27 = vsel %vm267_vm4, %v2864_v14, %v703_v35  ;;  %v760_v24 = vsel %vm267_vm4, %v2865_v62, %v759_v59 }
 0x130   : > { %v4036_v9 = vperm.slane %v704_v27, %v3531_v32  ;;  %v558_v10 = vrot.slane %v2850_v61, 4  ;;  %v561_v57 = vsel %vm267_vm4, %v2850_v61, %v560_v53  ;;  %v4041_v0 = vperm.slane %v760_v24, %v3531_v32 }
 0x131   : > { %v702_v52 = vsel %vm267_vm4, %v701_v4, %v2854_v40  ;;  %v4044_v55 = vperm.slane %v561_v57, %v3531_v32  ;;  %v502_v60 = vrot.slane %v2849_v39, 4  ;;  %v516_v59 = vrot.slane %v4015_v12, 4 }
 0x132   : > { %v4049_v15 = vperm.slane %v702_v52, %v3531_v32  ;;  %v758_v35 = vsel %vm267_vm4, %v757_v46, %v2855_v31  ;;  %v528_v40 = vrot.slane %v4027_v22, 4  ;;  %v559_v37 = vsel %vm267_vm4, %v558_v10, %v2840_v48 }
 0x133   : > { %v503_v45 = vsel %vm267_vm4, %v502_v60, %v2839_v47  ;;  %v505_v62 = vsel %vm267_vm4, %v2849_v39, %v504_v28  ;;  %v5288_v14 = vunpack.i.l.bf16 %v4021_v7  ;;  %v4061_v61 = vperm.slane %v758_v35, %v3531_v32 }
 0x134   : > { %v2883_v5 = vpop.permute.xlu1 %2882  ;;  %v582_v46 = vrot.slane %v4044_v55, 4  ;;  %v727_v27 = vrot.slane %v4049_v15, 4  ;;  %v4067_v24 = vperm.slane %v559_v37, %v3531_v32  ;;  %v4070_v28 = vperm.slane %v503_v45, %v3531_v32 }
 0x135   : > { %v2885_v4 = vunpack.i.h.bf16 %v2883_v5  ;;  %v2858_v48 = vpop.permute.xlu0 %2857  ;;  %v2884_v47 = vunpack.i.l.bf16 %v2883_v5  ;;  %v513_v39 = vperm.slane %v505_v62, %v3531_v32  ;;  %v4074_v60 = vpop.permute.xlu2 %2922 }
 0x136   : > { %v2860_v10 = vunpack.i.h.bf16 %v2858_v48  ;;  %v2859_v37 = vunpack.i.l.bf16 %v2858_v48 }
 0x137   : > { %v1185_v57 = vrot.slane %v2885_v4, 4  ;;  %v1188_v52 = vsel %vm267_vm4, %v2885_v4, %v1187_v30  ;;  %v1129_v35 = vrot.slane %v2884_v47, 4  ;;  %v1132_v19 = vsel %vm267_vm4, %v2884_v47, %v1131_v43 }
 0x138   : > { %v770_v11 = vsel %vm267_vm4, %v3997_v36, %v2860_v10  ;;  %v4080_v5 = vperm.slane %v1132_v19, %v3531_v32  ;;  %v4086_v62 = vperm.slane %v1188_v52, %v3531_v32  ;;  %v771_v30 = vrot.slane %v2860_v10, 4 }
 0x139   : > { %v1186_v45 = vsel %vm267_vm4, %v1185_v57, %v2875_v50  ;;  %v783_v4 = vrot.slane %v4061_v61, 4  ;;  %v4091_v43 = vrot.slane %v5287_v54, 4  ;;  %v1130_v36 = vsel %vm267_vm4, %v1129_v35, %v2874_v42 }
 0x13a   : > { %v4097_v19 = vperm.slane %v770_v11, %v3531_v32  ;;  %v4103_v47 = vrot.slane %v5288_v14, 4  ;;  %v772_v10 = vsel %vm267_vm4, %v2870_v25, %v771_v30  ;;  %v526_v57 = vrot.slane %v513_v39, 4 }
 0x13b   : > { %v4109_v6 = vperm.slane %v1186_v45, %v3531_v32  ;;  %v714_v11 = vsel %vm267_vm4, %v4001_v21, %v2859_v37  ;;  %v715_v42 = vrot.slane %v2859_v37, 4  ;;  %v4116_v35 = vperm.slane %v1130_v36, %v3531_v32 }
 0x13c   : > { %v4113_v52 = vpop.permute.xlu1 %2892  ;;  %v529_v54 = vsel %vm267_vm4, %v513_v39, %v528_v40  ;;  %v4122_v30 = vperm.slane %v772_v10, %v3531_v32  ;;  %v4132_v36 = vperm.slane %v714_v11, %v3531_v32  ;;  %v5289_v50 = vunpack.i.h.bf16 %v4074_v60 }
 0x13d   : > { %v2878_v25 = vpop.permute.xlu0 %2877  ;;  %v716_v21 = vsel %vm267_vm4, %v2869_v58, %v715_v42  ;;  %v4129_v37 = vperm.slane %v529_v54, %v3585_v63  ;;  %v5290_v40 = vunpack.i.l.bf16 %v4074_v60  ;;  %v585_v39 = vsel %vm267_vm4, %v4044_v55, %v584_v38 }
 0x13e   : > { %v4139_v10 = vperm.slane %v585_v39, %v3585_v63  ;;  %v527_v17 = vsel %vm267_vm4, %v526_v57, %v4027_v22  ;;  %v583_v58 = vsel %vm267_vm4, %v582_v46, %v4024_v13  ;;  %v517_v54 = vsel %vm267_vm4, %v4070_v28, %v516_v59  ;;  %v4159_v22 = vpop.permute.xlu2 %2937 }
 0x13f   : > { %v724_v11 = vperm.slane %v716_v21, %v3531_v32  ;;  %v4151_v42 = vperm.slane %v527_v17, %v3585_v63  ;;  %v4154_v55 = vperm.slane %v583_v58, %v3585_v63  ;;  %v4157_v38 = vperm.slane %v517_v54, %v3585_v63 }
 0x140   : > { %v3051_v13 = vpack.i.bf16 %v4139_v10, %v4129_v37  ;;  %v573_v59 = vsel %vm267_vm4, %v4067_v24, %v572_v2  ;;  %v2880_v46 = vunpack.i.h.bf16 %v2878_v25  ;;  %v2879_v57 = vunpack.i.l.bf16 %v2878_v25 }
 0x141   : > { %v3046_v21 = vpack.i.bf16 %v4154_v55, %v4151_v42  ;;  %v4170_v39 = vperm.slane %v573_v59, %v3585_v63  ;;  %v5291_v17 = vunpack.i.h.bf16 %v4113_v52  ;;  %v2894_v58 = vunpack.i.l.bf16 %v4113_v52 }
 0x142   : > { %3052 = vrot.lane.b32.xlu0 %v3051_v13, %s3371_s9  ;;  %v1199_v54 = vrot.slane %v2880_v46, 4  ;;  %v1142_v48 = vsel %vm267_vm4, %v4033_v23, %v2879_v57  ;;  %v1143_v45 = vrot.slane %v2879_v57, 4  ;;  %v1198_v2 = vsel %vm267_vm4, %v4019_v49, %v2880_v46 }
 0x143   : > { %v793_v31 = vrot.slane %v4122_v30, 4  ;;  %3047 = vrot.lane.b32.xlu1 %v3046_v21, %s3370_s8  ;;  %v3041_v13 = vpack.i.bf16 %v4170_v39, %v4157_v38  ;;  %v737_v57 = vrot.slane %v724_v11, 4  ;;  %v4190_v49 = vrot.slane %v5289_v50, 4 }
 0x144   : > { %v4179_v25 = vpop.permute.xlu1 %2907  ;;  %v1144_v46 = vsel %vm267_vm4, %v2889_v44, %v1143_v45  ;;  %v4197_v59 = vrot.slane %v5290_v40, 4  ;;  %v4201_v21 = vperm.slane %v1142_v48, %v3531_v32  ;;  %v1200_v14 = vsel %vm267_vm4, %v2890_v34, %v1199_v54 }
 0x145   : > { %v2903_v53 = vpop.permute.xlu0 %2902  ;;  %3042 = vrot.lane.b32.xlu2 %v3041_v13, %s3372_s10  ;;  %v4207_v50 = vperm.slane %v1198_v2, %v3531_v32  ;;  %v1395_v23 = vrot.slane %v5291_v17, 4  ;;  %v1339_v44 = vrot.slane %v2894_v58, 4  ;;  %v728_v45 = vsel %vm267_vm4, %v4132_v36, %v727_v27 }
 0x146   : > { %v784_v48 = vsel %vm267_vm4, %v4097_v19, %v783_v4  ;;  %v4220_v1 = vperm.slane %v1144_v46, %v3531_v32  ;;  %v4224_v54 = vperm.slane %v728_v45, %v3585_v63  ;;  %v4230_v13 = vperm.slane %v1200_v14, %v3531_v32 }
 0x147   : > { %v4227_v2 = vperm.slane %v784_v48, %v3585_v63  ;;  %v5319_v27 = vrot.slane %v4036_v9, 4  ;;  %v5320_v4 = vrot.slane %v4041_v0, 4  ;;  %v738_v17 = vsel %vm267_vm4, %v737_v57, %v4036_v9 }
 0x148   : > { %v4250_v34 = vperm.slane %v738_v17, %v3585_v63  ;;  %v2910_v9 = vunpack.i.h.bf16 %v4179_v25  ;;  %v2909_v16 = vunpack.i.l.bf16 %v4179_v25 }
 0x149   : > { %v740_v40 = vsel %vm267_vm4, %v724_v11, %v5319_v27  ;;  %v796_v46 = vsel %vm267_vm4, %v4122_v30, %v5320_v4  ;;  %v3056_v45 = vpack.i.bf16 %v4227_v2, %v4224_v54  ;;  %v4252_v11 = vpop.permute.xlu2 %2957  ;;  %v794_v30 = vsel %vm267_vm4, %v793_v31, %v4041_v0 }
 0x14a   : > { %v4244_v48 = vperm.slane %v740_v40, %v3585_v63  ;;  %v4247_v14 = vperm.slane %v796_v46, %v3585_v63  ;;  %v2905_v27 = vunpack.i.h.bf16 %v2903_v53  ;;  %v2904_v4 = vunpack.i.l.bf16 %v2903_v53 }
 0x14b   : > { %3057 = vrot.lane.b32.xlu1 %v3056_v45, %s3372_s10  ;;  %v4264_v17 = vperm.slane %v794_v30, %v3585_v63  ;;  %v1405_v51 = vrot.slane %v2910_v9, 4  ;;  %v1352_v25 = vsel %vm267_vm4, %v2909_v16, %v4103_v47  ;;  %v5324_v40 = vunpack.i.l.bf16 %v4021_v7 }
 0x14c   : > { %v4257_v57 = vpop.permute.xlu1 %2917  ;;  %v3066_v46 = vpack.i.bf16 %v4247_v14, %v4244_v48  ;;  %v1393_v0 = vrot.slane %v2905_v27, 4  ;;  %v1337_v53 = vrot.slane %v2904_v4, 4  ;;  %v1340_v31 = vsel %vm267_vm4, %v2904_v4, %v1339_v44 }
 0x14d   : > { %v4267_v18 = vpop.permute.xlu0 %2912  ;;  %v1396_v26 = vsel %vm267_vm4, %v2905_v27, %v1395_v23  ;;  %v3061_v45 = vpack.i.bf16 %v4264_v17, %v4250_v34  ;;  %v4276_v30 = vperm.slane %v1340_v31, %v3531_v32  ;;  %v1349_v44 = vrot.slane %v2909_v16, 4 }
 0x14e   : > { %3067 = vrot.lane.b32.xlu2 %v3066_v46, %s3371_s9  ;;  %v1338_v56 = vsel %vm267_vm4, %v1337_v53, %v2894_v58  ;;  %v4281_v20 = vperm.slane %v1396_v26, %v3531_v32  ;;  %v5321_v27 = vunpack.i.h.bf16 %v4159_v22  ;;  %v5322_v46 = vunpack.i.h.bf16 %v4113_v52 }
 0x14f   : > { %3062 = vrot.lane.b32.xlu0 %v3061_v45, %s3370_s8  ;;  %v5323_v26 = vunpack.i.l.bf16 %v4159_v22  ;;  %v5325_v23 = vunpack.i.h.bf16 %v4021_v7  ;;  %v4306_v52 = vperm.slane %v1338_v56, %v3531_v32  ;;  %v1408_v16 = vsel %vm267_vm4, %v2910_v9, %v4091_v43 }
 0x150   : > { %v4286_v4 = vrot.slane %v5321_v27, 4  ;;  %v1394_v31 = vsel %vm267_vm4, %v1393_v0, %v5322_v46  ;;  %v1350_v27 = vsel %vm267_vm4, %v1349_v44, %v5324_v40  ;;  %v4317_v40 = vperm.slane %v1352_v25, %v3531_v32 }
 0x151   : > { %v4297_v53 = vrot.slane %v5323_v26, 4  ;;  %v1406_v45 = vsel %vm267_vm4, %v1405_v51, %v5325_v23  ;;  %v4313_v46 = vperm.slane %v1394_v31, %v3531_v32  ;;  %v5326_v51 = vrot.slane %v4070_v28, 4  ;;  %v4338_v31 = vpop.permute.xlu2 %2967 }
 0x152   : > { %v4326_v44 = vperm.slane %v1350_v27, %v3531_v32  ;;  %v4329_v43 = vperm.slane %v1406_v45, %v3531_v32  ;;  %v5328_v25 = vrot.slane %v4067_v24, 4  ;;  %v542_v45 = vrot.slane %v4151_v42, 4 }
 0x153   : > { %v515_v56 = vsel %vm267_vm4, %v5326_v51, %v4015_v12  ;;  %v4343_v12 = vperm.slane %v1408_v16, %v3531_v32  ;;  %v598_v51 = vrot.slane %v4154_v55, 4  ;;  %v540_v24 = vrot.slane %v4157_v38, 4 }
 0x154   : > { %v4323_v7 = vpop.permute.xlu1 %2932  ;;  %v4332_v9 = vperm.slane %v515_v56, %v3585_v63  ;;  %v571_v23 = vsel %vm267_vm4, %v5328_v25, %v4011_v3  ;;  %v596_v3 = vrot.slane %v4170_v39, 4  ;;  %v2915_v25 = vunpack.i.h.bf16 %v4267_v18 }
 0x155   : > { %v4340_v28 = vpop.permute.xlu0 %2927  ;;  %v4346_v27 = vperm.slane %v571_v23, %v3585_v63  ;;  %v543_v16 = vsel %vm267_vm4, 0.0, %v542_v45  ;;  %v599_v26 = vsel %vm267_vm4, 0.0, %v598_v51  ;;  %v2914_v23 = vunpack.i.l.bf16 %v4267_v18 }
 0x156   : > { %5327 = vst [vmem:[#allocation18_spill] sm:$0xff] %v4332_v9  ;;  %v538_v56 = vrot.slane %v4332_v9, 4  ;;  %v3081_v0 = vpack.i.bf16 %v599_v26, %v543_v16  ;;  %v541_v55 = vsel %vm267_vm4, 0.0, %v540_v24  ;;  %v597_v58 = vsel %vm267_vm4, 0.0, %v596_v3 }
 0x157   : > { %5329 = vst [vmem:[#allocation19_spill] sm:$0xff] %v4346_v27  ;;  %v594_v47 = vrot.slane %v4346_v27, 4  ;;  %v3076_v39 = vpack.i.bf16 %v597_v58, %v541_v55  ;;  %v2040_v9 = vrot.slane %v2915_v25, 4  ;;  %v1984_v41 = vrot.slane %v2914_v23, 4 }
 0x158   : > { %v539_v42 = vsel %vm267_vm4, 0.0, %v538_v56  ;;  %3082 = vrot.lane.b32.xlu2 %v3081_v0, %s3375_s19  ;;  %v2920_v45 = vunpack.i.h.bf16 %v4257_v57  ;;  %v2919_v18 = vunpack.i.l.bf16 %v4257_v57  ;;  %v1373_v51 = vrot.slane %v4317_v40, 4 }
 0x159   : > { %v595_v38 = vsel %vm267_vm4, 0.0, %v594_v47  ;;  %3077 = vrot.lane.b32.xlu0 %v3076_v39, %s3374_s17  ;;  %v544_v47 = vrot.slane %v4129_v37, 4  ;;  %v600_v58 = vrot.slane %v4139_v10, 4  ;;  %v1429_v55 = vrot.slane %v4343_v12, 4 }
 0x15a   : > { %v3071_v33 = vpack.i.bf16 %v595_v38, %v539_v42  ;;  %v2041_v56 = vsel %vm267_vm4, %v2040_v9, %v2920_v45  ;;  %v2042_v24 = vrot.slane %v2920_v45, 4  ;;  %v1985_v0 = vsel %vm267_vm4, %v1984_v41, %v2919_v18  ;;  %v4383_v38 = vpop.permute.xlu2 %2982 }
 0x15b   : > { %v1986_v3 = vrot.slane %v2919_v18, 4  ;;  %v601_v9 = vsel %vm267_vm4, 0.0, %v600_v58  ;;  %v4388_v39 = vperm.slane %v2041_v56, %v3531_v32  ;;  %v4391_v45 = vperm.slane %v1985_v0, %v3531_v32 }
 0x15c   : > { %3072 = vrot.lane.b32.xlu1 %v3071_v33, %s3373_s11  ;;  %v4374_v16 = vpop.permute.xlu1 %2947  ;;  %v2043_v10 = vsel %vm267_vm4, %v2915_v25, %v2042_v24  ;;  %v545_v33 = vsel %vm267_vm4, 0.0, %v544_v47  ;;  %v2970_v18 = vunpack.i.h.bf16 %v4338_v31  ;;  %v2969_v42 = vunpack.i.l.bf16 %v4338_v31 }
 0x15d   : > { %v4385_v41 = vpop.permute.xlu0 %2942  ;;  %v1987_v25 = vsel %vm267_vm4, %v2914_v23, %v1986_v3  ;;  %v751_v47 = vrot.slane %v4224_v54, 4  ;;  %v807_v58 = vrot.slane %v4227_v2, 4  ;;  %v5330_v24 = vrot.slane %v4132_v36, 4 }
 0x15e   : > { %v4403_v56 = vperm.slane %v2043_v10, %v3531_v32  ;;  %v3086_v0 = vpack.i.bf16 %v601_v9, %v545_v33  ;;  %v5332_v31 = vrot.slane %v4097_v19, 4  ;;  %v2935_v33 = vunpack.i.h.bf16 %v4323_v7 }
 0x15f   : > { %v726_v57 = vsel %vm267_vm4, %v5330_v24, %v4049_v15  ;;  %v752_v54 = vsel %vm267_vm4, 0.0, %v751_v47  ;;  %v808_v2 = vsel %vm267_vm4, 0.0, %v807_v58  ;;  %v2930_v15 = vunpack.i.h.bf16 %v4340_v28 }
 0x160   : > { %v4406_v37 = vperm.slane %v726_v57, %v3585_v63  ;;  %v782_v23 = vsel %vm267_vm4, %v5332_v31, %v4061_v61  ;;  %v3096_v3 = vpack.i.bf16 %v808_v2, %v752_v54  ;;  %v2929_v57 = vunpack.i.l.bf16 %v4340_v28 }
 0x161   : > { %v4415_v36 = vperm.slane %v782_v23, %v3585_v63  ;;  %v2030_v19 = vrot.slane %v2930_v15, 4  ;;  %v2029_v9 = vsel %vm267_vm4, %v4190_v49, %v2930_v15  ;;  %v2934_v47 = vunpack.i.l.bf16 %v4323_v7 }
 0x162   : > { %5331 = vst [vmem:[#allocation20_spill] sm:$0xff] %v4406_v37  ;;  %v749_v10 = vrot.slane %v4406_v37, 4  ;;  %v4427_v58 = vperm.slane %v1987_v25, %v3531_v32  ;;  %3097 = vrot.lane.b32.xlu2 %v3096_v3, %s3374_s17  ;;  %v1973_v28 = vsel %vm267_vm4, %v4197_v59, %v2929_v57  ;;  %v1974_v31 = vrot.slane %v2929_v57, 4 }
 0x163   : > { %5333 = vst [vmem:[#allocation21_spill] sm:$0xff] %v4415_v36  ;;  %v805_v61 = vrot.slane %v4415_v36, 4  ;;  %v5334_v23 = vunpack.i.h.bf16 %v4074_v60  ;;  %v4438_v49 = vperm.slane %v2029_v9, %v3531_v32  ;;  %v1829_v7 = vrot.slane %v2935_v33, 4 }
 0x164   : > { %3087 = vrot.lane.b32.xlu1 %v3086_v0, %s3376_s20  ;;  %v750_v24 = vsel %vm267_vm4, 0.0, %v749_v10  ;;  %v4440_v25 = vpop.permute.xlu1 %2962  ;;  %v5335_v15 = vunpack.i.l.bf16 %v4074_v60  ;;  %v4446_v59 = vperm.slane %v1973_v28, %v3531_v32  ;;  %v4453_v57 = vsel %vm435_vm6, %v3766_v29, %v2970_v18  ;;  %v4460_v60 = vpop.permute.xlu2 %2987 }
 0x165   : > { %v806_v0 = vsel %vm267_vm4, 0.0, %v805_v61  ;;  %v2031_v54 = vsel %vm267_vm4, %v5334_v23, %v2030_v19  ;;  %v1773_v19 = vrot.slane %v2934_v47, 4  ;;  %v1776_v9 = vsel %vm267_vm4, %v2934_v47, %v4297_v53 }
 0x166   : > { %v3091_v2 = vpack.i.bf16 %v806_v0, %v750_v24  ;;  %v1975_v3 = vsel %vm267_vm4, %v5335_v15, %v1974_v31  ;;  %v4449_v10 = vperm.slane %v2031_v54, %v3531_v32  ;;  %v4462_v24 = vpop.permute.xlu0 %2952  ;;  %v4466_v28 = vsel %vm435_vm6, %v3763_v8, %v2969_v42 }
 0x167   : > { %v4456_v61 = vperm.slane %v1975_v3, %v3531_v32  ;;  %v4470_v29 = vperm.slane %v1776_v9, %v3531_v32  ;;  %v5336_v18 = vunpack.i.h.bf16 %v4159_v22  ;;  %v1832_v53 = vsel %vm267_vm4, %v2935_v33, %v4286_v4 }
 0x168   : > { %3092 = vrot.lane.b32.xlu0 %v3091_v2, %s3373_s11  ;;  %v5337_v8 = vunpack.i.l.bf16 %v4159_v22  ;;  %v4493_v33 = vperm.slane %v1832_v53, %v3531_v32  ;;  %v753_v3 = vrot.slane %v4250_v34, 4  ;;  %v809_v22 = vrot.slane %v4264_v17, 4 }
 0x169   : > { %v1830_v31 = vsel %vm267_vm4, %v1829_v7, %v5336_v18  ;;  %v5338_v9 = vrot.slane %v4080_v5, 4  ;;  %v811_v54 = vrot.slane %v4247_v14, 4  ;;  %v2945_v15 = vunpack.i.h.bf16 %v4385_v41 }
 0x16a   : > { %v1774_v42 = vsel %vm267_vm4, %v1773_v19, %v5337_v8  ;;  %v4487_v7 = vperm.slane %v1830_v31, %v3531_v32  ;;  %v5339_v31 = vrot.slane %v4086_v62, 4  ;;  %v754_v53 = vsel %vm267_vm4, 0.0, %v753_v3 }
 0x16b   : > { %v4490_v4 = vperm.slane %v1774_v42, %v3531_v32  ;;  %v1168_v18 = vsel %vm267_vm4, %v4220_v1, %v5338_v9  ;;  %v755_v42 = vrot.slane %v4244_v48, 4  ;;  %v810_v34 = vsel %vm267_vm4, 0.0, %v809_v22 }
 0x16c   : > { %v1224_v8 = vsel %vm267_vm4, %v4230_v13, %v5339_v31  ;;  %v4510_v17 = vperm.slane %v1168_v18, %v3585_v63  ;;  %v3101_v23 = vpack.i.bf16 %v810_v34, %v754_v53  ;;  %v2944_v3 = vunpack.i.l.bf16 %v4385_v41  ;;  %v4523_v31 = vpop.permute.xlu1 %2972  ;;  %v4530_v27 = vpop.permute.xlu2 %3007 }
 0x16d   : > { %v4513_v19 = vperm.slane %v1224_v8, %v3585_v63  ;;  %v756_v9 = vsel %vm267_vm4, 0.0, %v755_v42  ;;  %v2950_v22 = vunpack.i.h.bf16 %v4374_v16  ;;  %v2949_v18 = vunpack.i.l.bf16 %v4374_v16 }
 0x16e   : > { %3102 = vrot.lane.b32.xlu1 %v3101_v23, %s3375_s19  ;;  %v812_v14 = vsel %vm267_vm4, 0.0, %v811_v54  ;;  %v1817_v42 = vrot.slane %v2945_v15, 4  ;;  %v1761_v2 = vrot.slane %v2944_v3, 4  ;;  %v4532_v16 = vpop.permute.xlu0 %2977  ;;  %v5340_v8 = vrot.slane %v4116_v35, 4 }
 0x16f   : > { %v3121_v48 = vpack.i.bf16 %v4513_v19, %v4510_v17  ;;  %v3106_v34 = vpack.i.bf16 %v812_v14, %v756_v9  ;;  %v1819_v41 = vrot.slane %v2950_v22, 4  ;;  %v1763_v26 = vrot.slane %v2949_v18, 4 }
 0x170   : > { %v1818_v47 = vsel %vm267_vm4, %v1817_v42, %v2950_v22  ;;  %v1156_v23 = vsel %vm267_vm4, %v4201_v21, %v5340_v8  ;;  %v5341_v54 = vrot.slane %v4109_v6, 4  ;;  %v1374_v9 = vsel %vm267_vm4, %v1373_v51, %v4276_v30 }
 0x171   : > { %3122 = vrot.lane.b32.xlu2 %v3121_v48, %s3371_s9  ;;  %3107 = vrot.lane.b32.xlu0 %v3106_v34, %s3376_s20  ;;  %v1820_v22 = vsel %vm267_vm4, %v2945_v15, %v1819_v41  ;;  %v1762_v42 = vsel %vm267_vm4, %v1761_v2, %v2949_v18  ;;  %v1764_v8 = vsel %vm267_vm4, %v2944_v3, %v1763_v26  ;;  %v5345_v14 = vrot.slane %v4281_v20, 4 }
 0x172   : > { %v1212_v48 = vsel %vm267_vm4, %v4207_v50, %v5341_v54  ;;  %v4553_v53 = vperm.slane %v1818_v47, %v3531_v32  ;;  %v4556_v54 = vperm.slane %v1820_v22, %v3531_v32  ;;  %v4559_v0 = vperm.slane %v1762_v42, %v3531_v32 }
 0x173   : > { %v4562_v51 = vperm.slane %v1156_v23, %v3585_v63  ;;  %v4565_v34 = vperm.slane %v1764_v8, %v3531_v32  ;;  %v4568_v15 = vperm.slane %v1212_v48, %v3585_v63  ;;  %v4571_v26 = vperm.slane %v1374_v9, %v3585_v63 }
 0x174   : > { %v1430_v47 = vsel %vm267_vm4, %v1429_v55, %v4281_v20  ;;  %v5342_v48 = vrot.slane %v4220_v1, 4  ;;  %v5343_v55 = vrot.slane %v4230_v13, 4  ;;  %v2955_v13 = vunpack.i.h.bf16 %v4462_v24 }
 0x175   : > { %v4581_v32 = vperm.slane %v1430_v47, %v3585_v63  ;;  %v3111_v23 = vpack.i.bf16 %v4568_v15, %v4562_v51  ;;  %v1432_v2 = vsel %vm267_vm4, %v4343_v12, %v5345_v14  ;;  %v5346_v20 = vrot.slane %v4427_v58, 4 }
 0x176   : > { %v1166_v9 = vsel %vm267_vm4, %v5342_v48, %v4080_v5  ;;  %v1222_v22 = vsel %vm267_vm4, %v5343_v55, %v4086_v62  ;;  %v4604_v62 = vpop.permute.xlu1 %2992  ;;  %v2954_v55 = vunpack.i.l.bf16 %v4462_v24  ;;  %v4623_v24 = vpop.permute.xlu2 %3022  ;;  %v5347_v12 = vrot.slane %v4403_v56, 4 }
 0x177   : > { %v3131_v8 = vpack.i.bf16 %v4581_v32, %v4571_v26  ;;  %v1172_v47 = vperm.slane %v1166_v9, %v3585_v63  ;;  %v1228_v18 = vperm.slane %v1222_v22, %v3585_v63  ;;  %3112 = vrot.lane.b32.xlu1 %v3111_v23, %s3372_s10  ;;  %v5344_v9 = vrot.slane %v4276_v30, 4  ;;  %v4625_v30 = vpop.permute.xlu0 %2997 }
 0x178   : > { %v2965_v23 = vunpack.i.h.bf16 %v4440_v25  ;;  %v2065_v14 = vsel %vm267_vm4, %v5347_v12, %v4449_v10  ;;  %v2964_v5 = vunpack.i.l.bf16 %v4440_v25  ;;  %v438_v1 = vsel %vm437_vm7, %v4466_v28, %v2954_v55 }
 0x179   : > { %3132 = vrot.lane.b32.xlu2 %v3131_v8, %s3370_s8  ;;  %v3116_v48 = vpack.i.bf16 %v1228_v18, %v1172_v47  ;;  %v1376_v22 = vsel %vm267_vm4, %v4317_v40, %v5344_v9  ;;  %v4621_v8 = vperm.slane %v1432_v2, %v3585_v63  ;;  %v2009_v40 = vsel %vm267_vm4, %v5346_v20, %v4456_v61 }
 0x17a   : > { %v4618_v41 = vperm.slane %v1376_v22, %v3585_v63  ;;  %v5348_v9 = vrot.slane %v4306_v52, 4  ;;  %v5349_v22 = vrot.slane %v4313_v46, 4  ;;  %v4646_v42 = vperm.slane %v2009_v40, %v3585_v63 }
 0x17b   : > { %3117 = vrot.lane.b32.xlu0 %v3116_v48, %s3370_s8  ;;  %v4649_v20 = vperm.slane %v2065_v14, %v3585_v63  ;;  %v2980_v14 = vunpack.i.h.bf16 %v4532_v16  ;;  %v2979_v3 = vunpack.i.l.bf16 %v4532_v16  ;;  %v2975_v28 = vunpack.i.h.bf16 %v4523_v31 }
 0x17c   : > { %v1364_v2 = vsel %vm267_vm4, %v4326_v44, %v5348_v9  ;;  %v1420_v48 = vsel %vm267_vm4, %v4329_v43, %v5349_v22  ;;  %v450_v9 = vsel %vm437_vm7, %v4453_v57, %v2955_v13  ;;  %v3136_v22 = vpack.i.bf16 %v4621_v8, %v4618_v41 }
 0x17d   : > { %v4652_v12 = vperm.slane %v1364_v2, %v3585_v63  ;;  %v1428_v25 = vperm.slane %v1420_v48, %v3585_v63  ;;  %v3146_v40 = vpack.i.bf16 %v4649_v20, %v4646_v42  ;;  %v2974_v55 = vunpack.i.l.bf16 %v4523_v31 }
 0x17e   : > { %v1181_v13 = vrot.slane %v1172_v47, 4  ;;  %v1237_v2 = vrot.slane %v1228_v18, 4  ;;  %v451_v16 = vsel %vm439_vm8, %v450_v9, %v2975_v28  ;;  %v5350_v37 = vrot.slane %v4456_v61, 4  ;;  %v3003_v61 = vpop.permute.xlu1 %3002 }
 0x17f   : > { %3137 = vrot.lane.b32.xlu1 %v3136_v22, %s3371_s9  ;;  %v3126_v57 = vpack.i.bf16 %v1428_v25, %v4652_v12  ;;  %v440_v48 = vsel %vm439_vm8, %v438_v1, %v2974_v55  ;;  %v5351_v31 = vrot.slane %v4449_v10, 4  ;;  %v5352_v47 = vunpack.i.l.bf16 %v4252_v11 }
 0x180   : > { %v2011_v36 = vsel %vm267_vm4, %v4427_v58, %v5350_v37  ;;  %v1182_v9 = vsel %vm267_vm4, 0.0, %v1181_v13  ;;  %v5354_v13 = vrot.slane %v4446_v59, 4 }
 0x181   : > { %3147 = vrot.lane.b32.xlu2 %v3146_v40, %s3370_s8  ;;  %v2067_v22 = vsel %vm267_vm4, %v4403_v56, %v5351_v31  ;;  %v442_v18 = vsel %vm441_vm9, %v440_v48, %v5352_v47  ;;  %v5353_v40 = vunpack.i.h.bf16 %v4252_v11  ;;  %v1238_v56 = vsel %vm267_vm4, 0.0, %v1237_v2  ;;  %v4703_v48 = vpop.permute.xlu0 %3017 }
 0x182   : > { %v444_v37 = vsel %vm443_vm10, %v442_v18, %v2979_v3  ;;  %v4692_v10 = vperm.slane %v2011_v36, %v3585_v63  ;;  %v4697_v55 = vperm.slane %v2067_v22, %v3585_v63  ;;  %v3033_v3 = vpop.permute.xlu2 %3032  ;;  %v5356_v2 = vunpack.i.h.bf16 %v4383_v38 }
 0x183   : > { %v452_v1 = vsel %vm441_vm9, %v451_v16, %v5353_v40  ;;  %3127 = vrot.lane.b32.xlu0 %v3126_v57, %s3372_s10  ;;  %v446_v28 = vsel %vm445_vm11, %v444_v37, %v2964_v5  ;;  %v1999_v57 = vsel %vm267_vm4, %v4391_v45, %v5354_v13  ;;  %v5357_v16 = vrot.slane %v4438_v49, 4  ;;  %v5363_v37 = vld [vmem:[#allocation16_spill] sm:$0xff] }
 0x184   : > { %v453_v58 = vsel %vm443_vm10, %v452_v1, %v2980_v14  ;;  %v5355_v14 = vunpack.i.l.bf16 %v4383_v38  ;;  %v3181_v18 = vpack.i.bf16 %v1238_v56, %v1182_v9  ;;  %v3151_v38 = vpack.i.bf16 %v4697_v55, %v4692_v10 }
 0x185   : > { %v454_v11 = vsel %vm445_vm11, %v453_v58, %v2965_v23  ;;  %v2007_v23 = vperm.slane %v1999_v57, %v3585_v63  ;;  %v2055_v31 = vsel %vm267_vm4, %v4388_v39, %v5357_v16  ;;  %v3035_v58 = vunpack.i.h.bf16 %v3033_v3 }
 0x186   : > { %v448_v36 = vsel %vm447_vm12, %v446_v28, %v5355_v14  ;;  %v455_v5 = vsel %vm447_vm12, %v454_v11, %v5356_v2  ;;  %v2063_v40 = vperm.slane %v2055_v31, %v3585_v63  ;;  %v3034_v11 = vunpack.i.l.bf16 %v3033_v3 }
 0x187   : > { %v456_v22 = vpack.c.bf16 %v455_v5, %v448_v36  ;;  %3182 = vrot.lane.b32.xlu1 %v3181_v18, %s3375_s19  ;;  %v1387_v13 = vrot.slane %v4652_v12, 4  ;;  %v1443_v57 = vrot.slane %v1428_v25, 4  ;;  %v5358_v56 = vrot.slane %v4470_v29, 4 }
 0x188   : > { %v3141_v9 = vpack.i.bf16 %v2063_v40, %v2007_v23  ;;  %v5359_v36 = vrot.slane %v4493_v33, 4  ;;  %v5360_v5 = vrot.slane %v4559_v0, 4  ;;  %v3004_v47 = vunpack.i.l.bf16 %v3003_v61 }
 0x189   : > { %457 = vst [vmem:[#allocation3] sm:$0x33] %v456_v22  ;;  %3152 = vrot.lane.b32.xlu2 %v3151_v38, %s3371_s9  ;;  %v1798_v14 = vsel %vm267_vm4, %v5358_v56, %v4565_v34  ;;  %v1388_v16 = vsel %vm267_vm4, 0.0, %v1387_v13  ;;  %v1444_v31 = vsel %vm267_vm4, 0.0, %v1443_v57  ;;  %v5361_v22 = vld [vmem:[#allocation17_spill] sm:$0xff]  ;;  %v1721_v13 = vsel %vm435_vm6, %v5363_v37, %v3034_v11  ;;  %v3038_v11 = vpop.permute.xlu0 %3037 }
 0x18a   : > { %v1854_v2 = vsel %vm267_vm4, %v5359_v36, %v4556_v54  ;;  %v1788_v3 = vsel %vm267_vm4, %v4490_v4, %v5360_v5  ;;  %v1728_v18 = vsel %vm435_vm6, %v5361_v22, %v3035_v58  ;;  %v4746_v38 = vperm.slane %v1798_v14, %v3585_v63  ;;  %v3013_v14 = vpop.permute.xlu1 %3012 }
 0x18b   : > { %3142 = vrot.lane.b32.xlu0 %v3141_v9, %s3372_s10  ;;  %v4749_v56 = vperm.slane %v1854_v2, %v3585_v63  ;;  %v5362_v36 = vrot.slane %v4553_v53, 4  ;;  %v4758_v57 = vperm.slane %v1788_v3, %v3585_v63  ;;  %v3005_v58 = vunpack.i.h.bf16 %v3003_v61 }
 0x18c   : > { %v3196_v22 = vpack.i.bf16 %v1444_v31, %v1388_v16  ;;  %v2022_v2 = vrot.slane %v2007_v23, 4  ;;  %v2078_v28 = vrot.slane %v2063_v40, 4  ;;  %v3020_v12 = vunpack.i.h.bf16 %v4703_v48 }
 0x18d   : > { %v1844_v5 = vsel %vm267_vm4, %v4487_v7, %v5362_v36  ;;  %v1729_v1 = vsel %vm437_vm7, %v1728_v18, %v3005_v58  ;;  %v1179_v36 = vrot.slane %v4562_v51, 4  ;;  %v1235_v37 = vrot.slane %v4568_v15, 4 }
 0x18e   : > { %v4761_v9 = vperm.slane %v1844_v5, %v3585_v63  ;;  %v3161_v3 = vpack.i.bf16 %v4749_v56, %v4746_v38  ;;  %v3019_v5 = vunpack.i.l.bf16 %v4703_v48  ;;  %v1722_v25 = vsel %vm437_vm7, %v1721_v13, %v3004_v47 }
 0x18f   : > { %v5364_v61 = vrot.slane %v4565_v34, 4  ;;  %3197 = vrot.lane.b32.xlu1 %v3196_v22, %s3374_s17  ;;  %v2023_v15 = vsel %vm267_vm4, 0.0, %v2022_v2  ;;  %v2079_v40 = vsel %vm267_vm4, 0.0, %v2078_v28  ;;  %v1180_v16 = vsel %vm267_vm4, 0.0, %v1179_v36 }
 0x190   : > { %v3156_v51 = vpack.i.bf16 %v4761_v9, %v4758_v57  ;;  %v1236_v48 = vsel %vm267_vm4, 0.0, %v1235_v37  ;;  %v5365_v34 = vrot.slane %v4556_v54, 4  ;;  %v3040_v47 = vunpack.i.h.bf16 %v3038_v11 }
 0x191   : > { %v1800_v23 = vsel %vm267_vm4, %v4470_v29, %v5364_v61  ;;  %3162 = vrot.lane.b32.xlu2 %v3161_v3, %s3370_s8  ;;  %v3039_v31 = vunpack.i.l.bf16 %v3038_v11  ;;  %v3015_v13 = vunpack.i.h.bf16 %v3013_v14  ;;  %v3014_v58 = vunpack.i.l.bf16 %v3013_v14  ;;  %v5369_v11 = vld [vmem:[#allocation14_spill] sm:$0xff] }
 0x192   : > { %v1856_v29 = vsel %vm267_vm4, %v4493_v33, %v5365_v34  ;;  %v4788_v18 = vperm.slane %v1800_v23, %v3585_v63  ;;  %v5366_v28 = vrot.slane %v4490_v4, 4  ;;  %v4799_v54 = vsel %vm439_vm8, %v1729_v1, %v3040_v47 }
 0x193   : > { %3157 = vrot.lane.b32.xlu0 %v3156_v51, %s3372_s10  ;;  %v4796_v2 = vsel %vm439_vm8, %v1722_v25, %v3039_v31  ;;  %v5367_v36 = vrot.slane %v4487_v7, 4  ;;  %v4809_v4 = vperm.slane %v1856_v29, %v3585_v63  ;;  %v1086_v25 = vsel %vm435_vm6, %v5369_v11, %v3014_v58  ;;  %v3028_v58 = vpop.permute.xlu1 %3027 }
 0x194   : > { %v1786_v22 = vsel %vm267_vm4, %v5366_v28, %v4559_v0  ;;  %v5368_v0 = vld [vmem:[#allocation15_spill] sm:$0xff]  ;;  %v5370_v3 = vunpack.i.l.bf16 %v4460_v60  ;;  %v5371_v7 = vunpack.i.h.bf16 %v4460_v60  ;;  %v5372_v51 = vrot.slane %v4326_v44, 4 }
 0x195   : > { %v4802_v33 = vperm.slane %v1786_v22, %v3585_v63  ;;  %v1842_v14 = vsel %vm267_vm4, %v5367_v36, %v4553_v53  ;;  %v1093_v37 = vsel %vm435_vm6, %v5368_v0, %v3015_v13  ;;  %v3216_v29 = vpack.i.bf16 %v2079_v40, %v2023_v15 }
 0x196   : > { %v4816_v1 = vperm.slane %v1842_v14, %v3585_v63  ;;  %v1087_v61 = vsel %vm437_vm7, %v1086_v25, %v5370_v3  ;;  %v1094_v53 = vsel %vm437_vm7, %v1093_v37, %v5371_v7  ;;  %v1362_v34 = vsel %vm267_vm4, %v5372_v51, %v4306_v52 }
 0x197   : > { %v1809_v23 = vrot.slane %v4802_v33, 4  ;;  %v3176_v47 = vpack.i.bf16 %v1236_v48, %v1180_v16  ;;  %v1088_v31 = vsel %vm439_vm8, %v1087_v61, %v3019_v5  ;;  %v4831_v13 = vperm.slane %v1362_v34, %v3585_v63  ;;  %3217 = vrot.lane.b32.xlu1 %v3216_v29, %s3374_s17 }
 0x198   : > { %v1865_v28 = vrot.slane %v4816_v1, 4  ;;  %v5373_v60 = vrot.slane %v4329_v43, 4  ;;  %v5374_v44 = vrot.slane %v4201_v21, 4  ;;  %v5375_v15 = vrot.slane %v4207_v50, 4 }
 0x199   : > { %v1095_v40 = vsel %vm439_vm8, %v1094_v53, %v3020_v12  ;;  %v1385_v16 = vrot.slane %v4831_v13, 4  ;;  %3177 = vrot.lane.b32.xlu2 %v3176_v47, %s3374_s17  ;;  %v1810_v50 = vsel %vm267_vm4, 0.0, %v1809_v23  ;;  %v3029_v21 = vunpack.i.l.bf16 %v3028_v58 }
 0x19a   : > { %v1418_v22 = vsel %vm267_vm4, %v5373_v60, %v4313_v46  ;;  %v1154_v52 = vsel %vm267_vm4, %v5374_v44, %v4116_v35  ;;  %v1210_v5 = vsel %vm267_vm4, %v5375_v15, %v4109_v6  ;;  %v3166_v35 = vpack.i.bf16 %v4809_v4, %v4788_v18 }
 0x19b   : > { %v4850_v43 = vperm.slane %v1418_v22, %v3585_v63  ;;  %v4853_v46 = vperm.slane %v1154_v52, %v3585_v63  ;;  %v4860_v6 = vperm.slane %v1210_v5, %v3585_v63  ;;  %v3030_v36 = vunpack.i.h.bf16 %v3028_v58 }
 0x19c   : > { %v5376_v14 = vunpack.i.l.bf16 %v4604_v62  ;;  %3167 = vrot.lane.b32.xlu0 %v3166_v35, %s3371_s9  ;;  %v1866_v37 = vsel %vm267_vm4, 0.0, %v1865_v28  ;;  %v5377_v25 = vunpack.i.l.bf16 %v4623_v24  ;;  %v5378_v61 = vunpack.i.h.bf16 %v4604_v62 }
 0x19d   : > { %v1441_v12 = vrot.slane %v4850_v43, 4  ;;  %v1177_v48 = vrot.slane %v4853_v46, 4  ;;  %v1233_v11 = vrot.slane %v4860_v6, 4  ;;  %v1386_v53 = vsel %vm267_vm4, 0.0, %v1385_v16 }
 0x19e   : > { %v1089_v0 = vsel %vm441_vm9, %v1088_v31, %v5376_v14  ;;  %v1096_v7 = vsel %vm441_vm9, %v1095_v40, %v5378_v61  ;;  %v5379_v51 = vunpack.i.l.bf16 %v4625_v30  ;;  %v5380_v29 = vunpack.i.h.bf16 %v4623_v24 }
 0x19f   : > { %v1090_v3 = vsel %vm443_vm10, %v1089_v0, %v5377_v25  ;;  %v1442_v23 = vsel %vm267_vm4, 0.0, %v1441_v12  ;;  %v5381_v58 = vunpack.i.h.bf16 %v4625_v30  ;;  %v3226_v28 = vpack.i.bf16 %v1866_v37, %v1810_v50  ;;  %v4915_v14 = vpop.permute.xlu2 %3042 }
 0x1a0   : > { %v1091_v34 = vsel %vm445_vm11, %v1090_v3, %v5379_v51  ;;  %v1097_v47 = vsel %vm443_vm10, %v1096_v7, %v5380_v29  ;;  %v1178_v60 = vsel %vm267_vm4, 0.0, %v1177_v48  ;;  %v1234_v22 = vsel %vm267_vm4, 0.0, %v1233_v11 }
 0x1a1   : > { %v1092_v31 = vsel %vm447_vm12, %v1091_v34, %v3029_v21  ;;  %v1098_v62 = vsel %vm445_vm11, %v1097_v47, %v5381_v58  ;;  %v3191_v52 = vpack.i.bf16 %v1442_v23, %v1386_v53  ;;  %v2026_v5 = vrot.slane %v4692_v10, 4  ;;  %3227 = vrot.lane.b32.xlu1 %v3226_v28, %s3373_s11 }
 0x1a2   : > { %v1099_v44 = vsel %vm447_vm12, %v1098_v62, %v3030_v36  ;;  %v2082_v24 = vrot.slane %v4697_v55, 4  ;;  %v1996_v40 = vrot.slane %v4391_v45, 4  ;;  %v2052_v30 = vrot.slane %v4388_v39, 4 }
 0x1a3   : > { %v1100_v15 = vpack.c.bf16 %v1099_v44, %v1092_v31  ;;  %3192 = vrot.lane.b32.xlu2 %v3191_v52, %s3373_s11  ;;  %v3171_v16 = vpack.i.bf16 %v1234_v22, %v1178_v60  ;;  %v1183_v50 = vrot.slane %v4510_v17, 4  ;;  %v1239_v21 = vrot.slane %v4513_v19, 4  ;;  %v5383_v52 = vld [vmem:[#allocation12_spill] sm:$0xff] }
 0x1a4   : > { %v1997_v12 = vsel %vm267_vm4, %v1996_v40, %v4446_v59  ;;  %v2027_v45 = vsel %vm267_vm4, 0.0, %v2026_v5  ;;  %v2083_v10 = vsel %vm267_vm4, 0.0, %v2082_v24  ;;  %v2053_v39 = vsel %vm267_vm4, %v2052_v30, %v4438_v49  ;;  %v5385_v30 = vld [vmem:[#allocation11_spill] sm:$0xff] }
 0x1a5   : > { %v1102_v35 = vrot.slane %v1100_v15, 6  ;;  %3172 = vrot.lane.b32.xlu0 %v3171_v16, %s3373_s11  ;;  %v1391_v55 = vrot.slane %v4618_v41, 4  ;;  %v4908_v48 = vperm.slane %v1997_v12, %v3585_v63  ;;  %v4911_v19 = vperm.slane %v2053_v39, %v3585_v63 }
 0x1a6   : > { %v3231_v17 = vpack.i.bf16 %v2083_v10, %v2027_v45  ;;  %v1184_v59 = vsel %vm267_vm4, 0.0, %v1183_v50  ;;  %v1240_v36 = vsel %vm267_vm4, 0.0, %v1239_v21  ;;  %v1813_v0 = vrot.slane %v4746_v38, 4  ;;  %v5386_v45 = vld [vmem:[#allocation10_spill] sm:$0xff] }
 0x1a7   : > { %1104 = vst [vmem:[#allocation3 + $0x8] sm:$0xcc] %v1102_v35  ;;  %v1869_v37 = vrot.slane %v4749_v56, 4  ;;  %v1392_v49 = vsel %vm267_vm4, 0.0, %v1391_v55  ;;  %v2020_v41 = vrot.slane %v4908_v48, 4  ;;  %v2076_v63 = vrot.slane %v4911_v19, 4 }
 0x1a8   : > { %v3186_v11 = vpack.i.bf16 %v1240_v36, %v1184_v59  ;;  %v1389_v25 = vrot.slane %v4571_v26, 4  ;;  %v1445_v3 = vrot.slane %v4581_v32, 4  ;;  %v1814_v38 = vsel %vm267_vm4, 0.0, %v1813_v0  ;;  %v4936_v29 = vpop.permute.xlu2 %3067 }
 0x1a9   : > { %3232 = vrot.lane.b32.xlu1 %v3231_v17, %s3376_s20  ;;  %v1870_v56 = vsel %vm267_vm4, 0.0, %v1869_v37  ;;  %v2021_v61 = vsel %vm267_vm4, 0.0, %v2020_v41  ;;  %v2077_v7 = vsel %vm267_vm4, 0.0, %v2076_v63  ;;  %v1815_v26 = vrot.slane %v4788_v18, 4 }
 0x1aa   : > { %v3241_v53 = vpack.i.bf16 %v1870_v56, %v1814_v38  ;;  %v1390_v23 = vsel %vm267_vm4, 0.0, %v1389_v25  ;;  %v1446_v51 = vsel %vm267_vm4, 0.0, %v1445_v3  ;;  %v3206_v34 = vpack.i.bf16 %v2077_v7, %v2021_v61  ;;  %v5388_v61 = vld [vmem:[#allocation19_spill] sm:$0xff] }
 0x1ab   : > { %1474 = vrot.lane.b32.xlu2 %v1392_v49, %s3376_s20  ;;  %v3201_v32 = vpack.i.bf16 %v1446_v51, %v1390_v23  ;;  %v1447_v47 = vrot.slane %v4621_v8, 4  ;;  %v2024_v31 = vrot.slane %v4646_v42, 4  ;;  %v2080_v58 = vrot.slane %v4649_v20, 4  ;;  %v5382_v8 = vld [vmem:[#allocation13_spill] sm:$0xff] }
 0x1ac   : > { %v1816_v62 = vsel %vm267_vm4, 0.0, %v1815_v26  ;;  %v5384_v42 = vpack.i.bf16 %v5382_v8, %v5383_v52  ;;  %v1811_v5 = vrot.slane %v4758_v57, 4  ;;  %v1867_v24 = vrot.slane %v4761_v9, 4 }
 0x1ad   : > { %3187 = vrot.lane.b32.xlu0 %v3186_v11, %s3376_s20  ;;  %v1448_v28 = vsel %vm267_vm4, 0.0, %v1447_v47  ;;  %v2025_v60 = vsel %vm267_vm4, 0.0, %v2024_v31  ;;  %v2081_v22 = vsel %vm267_vm4, 0.0, %v2080_v58  ;;  %v1663_v16 = vrot.slane %v5385_v30, 4 }
 0x1ae   : > { %v3246_v18 = vpack.i.bf16 %v1816_v62, %v1448_v28  ;;  %v3221_v20 = vpack.i.bf16 %v2081_v22, %v2025_v60  ;;  %v1812_v35 = vsel %vm267_vm4, 0.0, %v1811_v5  ;;  %v1868_v50 = vsel %vm267_vm4, 0.0, %v1867_v24 }
 0x1af   : > { %v3010_v21 = vunpack.i.h.bf16 %v4530_v27  ;;  %v3009_v12 = vunpack.i.l.bf16 %v4530_v27  ;;  %v5387_v10 = vpack.i.bf16 %v5385_v30, %v5386_v45  ;;  %v1664_v57 = vsel %vm267_vm4, 0.0, %v1663_v16 }
 0x1b0   : > { %v3236_v9 = vpack.i.bf16 %v1868_v50, %v1812_v35  ;;  %v1871_v27 = vrot.slane %v4809_v4, 4  ;;  %v1607_v36 = vrot.slane %v5386_v45, 4  ;;  %v3045_v4 = vunpack.i.h.bf16 %v4915_v14 }
 0x1b1   : > { %3242 = vrot.lane.b32.xlu1 %v3241_v53, %s3375_s19  ;;  %v4969_v55 = vsel %vm441_vm9, %v4796_v2, %v3009_v12  ;;  %v4973_v17 = vsel %vm441_vm9, %v4799_v54, %v3010_v21  ;;  %v3044_v38 = vunpack.i.l.bf16 %v4915_v14  ;;  %v5389_v53 = vld [vmem:[#allocation18_spill] sm:$0xff] }
 0x1b2   : > { %v3083_v40 = vpop.permute.xlu2 %3082  ;;  %v1872_v37 = vsel %vm267_vm4, 0.0, %v1871_v27  ;;  %v1608_v49 = vsel %vm267_vm4, 0.0, %v1607_v36 }
 0x1b3   : > { %3207 = vrot.lane.b32.xlu2 %v3206_v34, %s3373_s11  ;;  %v3251_v41 = vpack.i.bf16 %v1608_v49, %v1872_v37  ;;  %v3085_v47 = vunpack.i.h.bf16 %v3083_v40  ;;  %v3084_v31 = vunpack.i.l.bf16 %v3083_v40 }
 0x1b4   : > { %v3053_v15 = vpop.permute.xlu0 %3052 }
 0x1b5   : > { %3202 = vrot.lane.b32.xlu0 %v3201_v32, %s3375_s19  ;;  %v3048_v44 = vpop.permute.xlu1 %3047  ;;  %v3055_v22 = vunpack.i.h.bf16 %v3053_v15 }
 0x1b6   : > { %v3050_v51 = vunpack.i.h.bf16 %v3048_v44  ;;  %v3049_v34 = vunpack.i.l.bf16 %v3048_v44  ;;  %v3054_v44 = vunpack.i.l.bf16 %v3053_v15 }
 0x1b9   : > { %3247 = vrot.lane.b32.xlu1 %v3246_v18, %s3376_s20 }
 0x1bb   : > { %3212 = vrot.lane.b32.xlu2 %v5384_v42, %s3375_s19 }
 0x1bc   : > { %v3098_v0 = vpop.permute.xlu2 %3097 }
 0x1bd   : > { %3222 = vrot.lane.b32.xlu0 %v3221_v20, %s3375_s19  ;;  %v3058_v59 = vpop.permute.xlu1 %3057  ;;  %v3100_v49 = vunpack.i.h.bf16 %v3098_v0 }
 0x1be   : > { %v3060_v45 = vunpack.i.h.bf16 %v3058_v59  ;;  %v3059_v15 = vunpack.i.l.bf16 %v3058_v59 }
 0x1c1   : > { %3257 = vrot.lane.b32.xlu1 %v5387_v10, %s3371_s9  ;;  %v4965_v39 = vpop.permute.xlu0 %3062  ;;  %v5390_v10 = vld [vmem:[#allocation21_spill] sm:$0xff] }
 0x1c2   : > { %v3064_v59 = vunpack.i.l.bf16 %v4965_v39 }
 0x1c3   : > { %1718 = vrot.lane.b32.xlu2 %v1664_v57, %s3376_s20 }
 0x1c5   : > { %3237 = vrot.lane.b32.xlu0 %v3236_v9, %s3374_s17  ;;  %v5391_v9 = vld [vmem:[#allocation20_spill] sm:$0xff] }
 0x1cb   : > { %v3078_v2 = vpop.permute.xlu0 %3077  ;;  %v4983_v56 = vpop.permute.xlu2 %3122 }
 0x1cc   : > { %v3080_v25 = vunpack.i.h.bf16 %v3078_v2  ;;  %v3079_v3 = vunpack.i.l.bf16 %v3078_v2 }
 0x1cd   : > { %3252 = vrot.lane.b32.xlu0 %v3251_v41, %s3376_s20  ;;  %v3099_v41 = vunpack.i.l.bf16 %v3098_v0  ;;  %s2606_s20 = scalar_lea.hbm %s5286_s3, %s3419_s16 }
 0x1ce   : > { %v3073_v63 = vpop.permute.xlu1 %3072  ;;  %s2610_s26 = sshll.u32 %s2606_s20, 4  ;;  %s2611_s26 = int_to_ptr.hbm [resolvable:$true] %s2610_s26 }
 0x1cf   : > { %v3075_v11 = vunpack.i.h.bf16 %v3073_v63  ;;  %v3074_v54 = vunpack.i.l.bf16 %v3073_v63  ;;  %s3308_s30 = sshra.s32 %s2611_s26, 4  ;;  %s3309_s30 = int_to_ptr.hbm [resolvable:$true] %s3308_s30 }
 0x1d0   : > { %s3310_s4 = scalar_lea.hbm %s3309_s30, 1  ;;  %p3315_p0 = scmp.lt.s32.totalorder %s3309_s30, %s5286_s3 }
 0x1d1   : > { %v665_v7 = vsel %vm435_vm6, %v5388_v61, %v3075_v11  ;;  %v658_v23 = vsel %vm435_vm6, %v5389_v53, %v3074_v54  ;;  %v3065_v11 = vunpack.i.h.bf16 %v4965_v39  ;;  %p3311_p6 = scmp.ne.s32.totalorder %s3309_s30, %s3310_s4  ;;  %p3316_p2 = scmp.lt.s32.totalorder %s3314_s23, %s3310_s4 }
 0x1d2   : > { %v659_v26 = vsel %vm437_vm7, %v658_v23, %v3044_v38  ;;  %v666_v32 = vsel %vm437_vm7, %v665_v7, %v3045_v4  ;;  %v3070_v4 = vunpack.i.h.bf16 %v4936_v29  ;;  %v3069_v38 = vunpack.i.l.bf16 %v4936_v29 }
 0x1d3   : > { %v660_v58 = vsel %vm439_vm8, %v659_v26, %v3079_v3  ;;  %v667_v14 = vsel %vm439_vm8, %v666_v32, %v3080_v25  ;;  %v5001_v16 = vpop.permute.xlu2 %3132  ;;  %p3312_p12 = pnand %p3311_p6, %p3447_p10  ;;  %p3317_p3 = por %p3316_p2, %p3315_p0 }
 0x1d4   : > { %v661_v62 = vsel %vm441_vm9, %v660_v58, %v3049_v34  ;;  %v668_v28 = vsel %vm441_vm9, %v667_v14, %v3050_v51 }
 0x1d5   : > { %v662_v18 = vsel %vm443_vm10, %v661_v62, %v3084_v31  ;;  %v669_v60 = vsel %vm443_vm10, %v668_v28, %v3085_v47  ;;  %p3313_p13 = pneg %p3312_p12 }
 0x1d6   : > { %v3088_v8 = vpop.permute.xlu1 %3087  ;;  %v663_v20 = vsel %vm445_vm11, %v662_v18, %v3054_v44  ;;  %v670_v5 = vsel %vm445_vm11, %v669_v60, %v3055_v22 }
 0x1d7   : > { %v3090_v52 = vunpack.i.h.bf16 %v3088_v8  ;;  %v3089_v42 = vunpack.i.l.bf16 %v3088_v8  ;;  %p3318_p4 = pnand %p3317_p3, %p3313_p13 }
 0x1d9   : > { %v664_v24 = vsel %vm447_vm12, %v663_v20, %v3089_v42  ;;  %v671_v40 = vsel %vm447_vm12, %v670_v5, %v3090_v52 }
 0x1da   : > { %v672_v30 = vpack.c.bf16 %v671_v40, %v664_v24  ;;  %v3093_v35 = vpop.permute.xlu0 %3092 }
 0x1db   : > { %v3095_v21 = vunpack.i.h.bf16 %v3093_v35  ;;  %v3094_v12 = vunpack.i.l.bf16 %v3093_v35  ;;  %v5015_v61 = vpop.permute.xlu2 %3147 }
 0x1dc   : > { %v674_v50 = vrot.slane %v672_v30, 6 }
 0x1dd   : > { %v876_v57 = vsel %vm435_vm6, %v5390_v10, %v3095_v21  ;;  %v869_v27 = vsel %vm435_vm6, %v5391_v9, %v3094_v12 }
 0x1de   : > { %676 = vst [vmem:[#allocation3] sm:$0xcc] %v674_v50  ;;  %v870_v36 = vsel %vm437_vm7, %v869_v27, %v3059_v15  ;;  %v877_v37 = vsel %vm437_vm7, %v876_v57, %v3060_v45 }
 0x1df   : > { %v871_v2 = vsel %vm439_vm8, %v870_v36, %v3099_v41  ;;  %v878_v63 = vsel %vm439_vm8, %v877_v37, %v3100_v49 }
 0x1e0   : > { %v3103_v54 = vpop.permute.xlu1 %3102  ;;  %v872_v7 = vsel %vm441_vm9, %v871_v2, %v3064_v59  ;;  %v879_v0 = vsel %vm441_vm9, %v878_v63, %v3065_v11 }
 0x1e1   : > { %v3105_v25 = vunpack.i.h.bf16 %v3103_v54  ;;  %v3104_v3 = vunpack.i.l.bf16 %v3103_v54 }
 0x1e3   : > { %v873_v53 = vsel %vm443_vm10, %v872_v7, %v3104_v3  ;;  %v880_v23 = vsel %vm443_vm10, %v879_v0, %v3105_v25  ;;  %v3108_v51 = vpop.permute.xlu0 %3107  ;;  %v5025_v14 = vpop.permute.xlu2 %3152 }
 0x1e4   : > { %v3110_v34 = vunpack.i.h.bf16 %v3108_v51  ;;  %v3109_v39 = vunpack.i.l.bf16 %v3108_v51  ;;  %v874_v26 = vsel %vm445_vm11, %v873_v53, %v3069_v38  ;;  %v881_v32 = vsel %vm445_vm11, %v880_v23, %v3070_v4 }
 0x1e5   : > { %v3125_v4 = vunpack.i.h.bf16 %v4983_v56  ;;  %v3124_v38 = vunpack.i.l.bf16 %v4983_v56 }
 0x1e6   : > { %v875_v47 = vsel %vm447_vm12, %v874_v26, %v3109_v39  ;;  %v882_v29 = vsel %vm447_vm12, %v881_v32, %v3110_v34 }
 0x1e7   : > { %v883_v31 = vpack.c.bf16 %v882_v29, %v875_v47 }
 0x1e9   : > { %884 = vst [vmem:[#allocation3 + $0x8] sm:$0x33] %v883_v31  ;;  %v3113_v58 = vpop.permute.xlu1 %3112 }
 0x1ea   : > { %v3115_v12 = vunpack.i.h.bf16 %v3113_v58  ;;  %v3114_v45 = vunpack.i.l.bf16 %v3113_v58 }
 0x1eb   : > { %v5029_v60 = vpop.permute.xlu2 %3162 }
 0x1ed   : > { %v3118_v62 = vpop.permute.xlu0 %3117 }
 0x1ee   : > { %v3120_v27 = vunpack.i.h.bf16 %v3118_v62  ;;  %v3119_v36 = vunpack.i.l.bf16 %v3118_v62 }
 0x1f1   : > { %v5027_v28 = vpop.permute.xlu1 %3137 }
 0x1f3   : > { %v3178_v8 = vpop.permute.xlu2 %3177 }
 0x1f4   : > { %v3180_v15 = vunpack.i.h.bf16 %v3178_v8  ;;  %v3179_v10 = vunpack.i.l.bf16 %v3178_v8 }
 0x1f5   : > { %v3128_v18 = vpop.permute.xlu0 %3127 }
 0x1f6   : > { %v3129_v31 = vunpack.i.l.bf16 %v3128_v18 }
 0x1f9   : > { %v3183_v22 = vpop.permute.xlu1 %3182 }
 0x1fa   : > { %v3185_v41 = vunpack.i.h.bf16 %v3183_v22  ;;  %v3184_v2 = vunpack.i.l.bf16 %v3183_v22  ;;  %v3130_v22 = vunpack.i.h.bf16 %v3128_v18  ;;  %v2177_v18 = vld [vmem:[%s5285_s2] sm:$0xff] }
 0x1fd   : > { %v5031_v44 = vpop.permute.xlu0 %3142  ;;  %v3193_v5 = vpop.permute.xlu2 %3192 }
 0x1fe   : > { %v3194_v25 = vunpack.i.l.bf16 %v3193_v5  ;;  %v3195_v7 = vunpack.i.h.bf16 %v3193_v5 }
 0x200   : > { %v1505_v26 = vsel %vm435_vm6, %v4831_v13, %v3194_v25  ;;  %v1512_v56 = vsel %vm435_vm6, %v4850_v43, %v3195_v7 }
 0x201   : > { %v3198_v52 = vpop.permute.xlu1 %3197 }
 0x202   : > { %v3199_v32 = vunpack.i.l.bf16 %v3198_v52  ;;  %v3200_v58 = vunpack.i.h.bf16 %v3198_v52 }
 0x205   : > { %v5033_v42 = vpop.permute.xlu0 %3157  ;;  %v5041_v30 = vpop.permute.xlu2 %1474 }
 0x209   : > { %v5035_v20 = vpop.permute.xlu1 %3217 }
 0x20d   : > { %v3208_v51 = vpop.permute.xlu2 %3207 }
 0x20e   : > { %v5037_v24 = vpop.permute.xlu0 %3167  ;;  %v3210_v8 = vunpack.i.h.bf16 %v3208_v51  ;;  %v3209_v5 = vunpack.i.l.bf16 %v3208_v51  ;;  %v3154_v51 = vunpack.i.l.bf16 %v5025_v14 }
 0x213   : > { %v5039_v40 = vpop.permute.xlu1 %3227 }
 0x217   : > { %v3173_v35 = vpop.permute.xlu0 %3172 }
 0x218   : > { %v3175_v50 = vunpack.i.h.bf16 %v3173_v35  ;;  %v3174_v21 = vunpack.i.l.bf16 %v3173_v35 }
 0x21a   : > { %v1304_v57 = vsel %vm435_vm6, %v4860_v6, %v3175_v50  ;;  %v1297_v9 = vsel %vm435_vm6, %v4853_v46, %v3174_v21  ;;  %v1506_v50 = vsel %vm437_vm7, %v1505_v26, %v3129_v31  ;;  %v1513_v21 = vsel %vm437_vm7, %v1512_v56, %v3130_v22 }
 0x21b   : > { %v1298_v37 = vsel %vm437_vm7, %v1297_v9, %v3114_v45  ;;  %v1305_v49 = vsel %vm437_vm7, %v1304_v57, %v3115_v12  ;;  %v5051_v59 = vpop.permute.xlu1 %3232  ;;  %v1507_v13 = vsel %vm439_vm8, %v1506_v50, %v3199_v32  ;;  %v3135_v12 = vunpack.i.h.bf16 %v5001_v16 }
 0x21c   : > { %v1299_v63 = vsel %vm439_vm8, %v1298_v37, %v3179_v10  ;;  %v1306_v11 = vsel %vm439_vm8, %v1305_v49, %v3180_v15  ;;  %v3134_v45 = vunpack.i.l.bf16 %v5001_v16  ;;  %v1514_v43 = vsel %vm439_vm8, %v1513_v21, %v3200_v58  ;;  %v2178_v15 = vld [vmem:[%s5285_s2 + $0x8] sm:$0xff] }
 0x21d   : > { %v1300_v54 = vsel %vm441_vm9, %v1299_v63, %v3119_v36  ;;  %v1307_v6 = vsel %vm441_vm9, %v1306_v11, %v3120_v27  ;;  %v2147_v10 = vsel %vm435_vm6, %v4911_v19, %v3210_v8  ;;  %v2140_v57 = vsel %vm435_vm6, %v4908_v48, %v3209_v5 }
 0x21e   : > { %v1301_v46 = vsel %vm443_vm10, %v1300_v54, %v3184_v2  ;;  %v1308_v3 = vsel %vm443_vm10, %v1307_v6, %v3185_v41  ;;  %v3377_v16 = vmov 0   ;;  %v3145_v36 = vunpack.i.h.bf16 %v5031_v44 }
 0x21f   : > { %v3188_v0 = vpop.permute.xlu0 %3187  ;;  %v1302_v34 = vsel %vm445_vm11, %v1301_v46, %v3124_v38  ;;  %v1309_v39 = vsel %vm445_vm11, %v1308_v3, %v3125_v4  ;;  %3262 = vset.pattern.permute.xlu1 %v3377_v16  ;;  %3261 = vset.pattern.permute.xlu0 %v3377_v16  ;;  %v3144_v37 = vunpack.i.l.bf16 %v5031_v44  ;;  %v1508_v49 = vsel %vm441_vm9, %v1507_v13, %v3134_v45  ;;  %v3213_v45 = vpop.permute.xlu2 %3212 }
 0x220   : > { %v3190_v53 = vunpack.i.h.bf16 %v3188_v0  ;;  %v3189_v23 = vunpack.i.l.bf16 %v3188_v0  ;;  %2195 = vperm.xlu0 %3261, %v2177_v18   ;;  %2200 = vperm.xlu1 %3262, %v2178_v15   ;;  %v3139_v41 = vunpack.i.l.bf16 %v5027_v28  ;;  %v1515_v2 = vsel %vm441_vm9, %v1514_v43, %v3135_v12  ;;  %v2185_v43 = vld [vmem:[%s5285_s2 + $0x40] sm:$0xff] }
 0x221   : > { %3263 = vset.pattern.permute.xlu2 %v3377_v16  ;;  %v2148_v48 = vsel %vm437_vm7, %v2147_v10, %v3145_v36  ;;  %v2141_v63 = vsel %vm437_vm7, %v2140_v57, %v3144_v37  ;;  %v3140_v54 = vunpack.i.h.bf16 %v5027_v28  ;;  %v3220_v44 = vunpack.i.h.bf16 %v5035_v20 }
 0x222   : > { %v1303_v47 = vsel %vm447_vm12, %v1302_v34, %v3189_v23  ;;  %v1310_v29 = vsel %vm447_vm12, %v1309_v39, %v3190_v53  ;;  %v3219_v6 = vunpack.i.l.bf16 %v5035_v20  ;;  %v3150_v3 = vunpack.i.h.bf16 %v5015_v61  ;;  %v2182_v20 = vld [vmem:[%s5285_s2 + $0x28] sm:$0xff]  ;;  %v2180_v53 = vld [vmem:[%s5285_s2 + $0x18] sm:$0xff] }
 0x223   : > { %v1311_v62 = vpack.c.bf16 %v1310_v29, %v1303_v47  ;;  %v5067_v35 = vpop.permute.xlu1 %3242  ;;  %v3149_v38 = vunpack.i.l.bf16 %v5015_v61  ;;  %v2149_v28 = vsel %vm439_vm8, %v2148_v48, %v3220_v44  ;;  %v3155_v23 = vunpack.i.h.bf16 %v5025_v14 }
 0x224   : > { %v2142_v0 = vsel %vm439_vm8, %v2141_v63, %v3219_v6  ;;  %v3230_v26 = vunpack.i.h.bf16 %v5039_v40  ;;  %v3229_v31 = vunpack.i.l.bf16 %v5039_v40  ;;  %v3235_v56 = vunpack.i.h.bf16 %v5051_v59 }
 0x225   : > { %1312 = vst [vmem:[#allocation3 + $0x10] sm:$0x33] %v1311_v62  ;;  %v2143_v58 = vsel %vm441_vm9, %v2142_v0, %v3149_v38  ;;  %v2150_v62 = vsel %vm441_vm9, %v2149_v28, %v3150_v3  ;;  %v3234_v14 = vunpack.i.l.bf16 %v5051_v59  ;;  %v3160_v18 = vunpack.i.h.bf16 %v5033_v42 }
 0x226   : > { %v1936_v12 = vsel %vm435_vm6, %v4816_v1, %v3230_v26  ;;  %v1929_v59 = vsel %vm435_vm6, %v4802_v33, %v3229_v31  ;;  %v3159_v15 = vunpack.i.l.bf16 %v5033_v42  ;;  %v3165_v1 = vunpack.i.h.bf16 %v5029_v60 }
 0x227   : > { %v3203_v52 = vpop.permute.xlu0 %3202  ;;  %v3215_v16 = vunpack.i.h.bf16 %v3213_v45  ;;  %v1937_v37 = vsel %vm437_vm7, %v1936_v12, %v3160_v18  ;;  %v3170_v44 = vunpack.i.h.bf16 %v5037_v24  ;;  %v3169_v6 = vunpack.i.l.bf16 %v5037_v24  ;;  %v2718_v18 = vld [vmem:[#allocation3] sm:$0xf] }
 0x228   : > { %v3205_v9 = vunpack.i.h.bf16 %v3203_v52  ;;  %v3204_v27 = vunpack.i.l.bf16 %v3203_v52  ;;  %2220 = vperm.xlu0 %3261, %v2182_v20   ;;  %2210 = vperm.xlu1 %3262, %v2180_v53   ;;  %v2183_v52 = vld [vmem:[%s5285_s2 + $0x30] sm:$0xff]  ;;  %v1930_v36 = vsel %vm437_vm7, %v1929_v59, %v3159_v15  ;;  %v2760_v59 = vld [vmem:[#allocation3 + $0x4] sm:$0xf0] }
 0x229   : > { %v1732_v3 = vsel %vm443_vm10, %v4973_v17, %v3215_v16  ;;  %v2719_v15 = vor.u32 %v2760_v59, %v2718_v18  ;;  %v2752_v16 = vld [vmem:[%s5284_s1 + $0x8] sm:$0xff] }
 0x22a   : > { %v1509_v19 = vsel %vm443_vm10, %v1508_v49, %v3204_v27  ;;  %v1516_v11 = vsel %vm443_vm10, %v1515_v2, %v3205_v9  ;;  %v3164_v27 = vunpack.i.l.bf16 %v5029_v60  ;;  %v3214_v49 = vunpack.i.l.bf16 %v3213_v45  ;;  %v2192_v45 = vld [vmem:[%s5285_s2 + $0x78] sm:$0xff] }
 0x22b   : > { %v1510_v25 = vsel %vm445_vm11, %v1509_v19, %v3139_v41  ;;  %v5098_v46 = vpop.permute.xlu1 %3247  ;;  %v1517_v7 = vsel %vm445_vm11, %v1516_v11, %v3140_v54  ;;  %v3244_v41 = vunpack.i.l.bf16 %v5067_v35  ;;  %v3245_v60 = vunpack.i.h.bf16 %v5067_v35  ;;  %v2188_v35 = vld [vmem:[%s5285_s2 + $0x58] sm:$0xff] }
 0x22c   : > { %v3249_v4 = vunpack.i.l.bf16 %v5098_v46  ;;  %v1511_v61 = vsel %vm447_vm12, %v1510_v25, %v5041_v30  ;;  %v1725_v25 = vsel %vm443_vm10, %v4969_v55, %v3214_v49  ;;  %v3250_v17 = vunpack.i.h.bf16 %v5098_v46  ;;  %v2753_v49 = vld [vmem:[%s5284_s1 + $0x10] sm:$0xff] }
 0x22e   : > { %v1518_v34 = vsel %vm447_vm12, %v1517_v7, %v3249_v4  ;;  %v2186_v7 = vld [vmem:[%s5285_s2 + $0x48] sm:$0xff] }
 0x22f   : > { %v3223_v39 = vpop.permute.xlu0 %3222  ;;  %v1519_v32 = vpack.c.bf16 %v1518_v34, %v1511_v61  ;;  %v1719_v61 = vpop.permute.xlu2 %1718 }
 0x230   : > { %v3225_v47 = vunpack.i.h.bf16 %v3223_v39  ;;  %v3224_v29 = vunpack.i.l.bf16 %v3223_v39  ;;  %2235 = vperm.xlu0 %3261, %v2185_v43   ;;  %2225 = vperm.xlu1 %3262, %v2183_v52   ;;  %v2181_v43 = vld [vmem:[%s5285_s2 + $0x20] sm:$0xff]  ;;  %v2720_v52 = vld [vmem:[#allocation3 + $0x8] sm:$0xf0] }
 0x231   : > { %v1521_v30 = vrot.slane %v1519_v32, 6 }
 0x232   : > { %v2144_v22 = vsel %vm443_vm10, %v2143_v58, %v3224_v29  ;;  %v2151_v8 = vsel %vm443_vm10, %v2150_v62, %v3225_v47 }
 0x233   : > { %v2145_v5 = vsel %vm445_vm11, %v2144_v22, %v3154_v51  ;;  %v2152_v50 = vsel %vm445_vm11, %v2151_v8, %v3155_v23  ;;  %1523 = vst [vmem:[#allocation3 + $0x10] sm:$0xcc] %v1521_v30  ;;  %v3258_v57 = vpop.permute.xlu1 %3257  ;;  %v2191_v30 = vld [vmem:[%s5285_s2 + $0x70] sm:$0xff]  ;;  %v2189_v22 = vld [vmem:[%s5285_s2 + $0x60] sm:$0xff] }
 0x234   : > { %v2146_v40 = vsel %vm447_vm12, %v2145_v5, %v3234_v14  ;;  %v2153_v13 = vsel %vm447_vm12, %v2152_v50, %v3235_v56  ;;  %v3260_v2 = vunpack.i.h.bf16 %v3258_v57  ;;  %v3259_v11 = vunpack.i.l.bf16 %v3258_v57  ;;  %v2179_v8 = vld [vmem:[%s5285_s2 + $0x10] sm:$0xff]  ;;  %v2751_v57 = vld [vmem:[%s5284_s1] sm:$0xff] }
 0x235   : > { %v2154_v21 = vpack.c.bf16 %v2153_v13, %v2146_v40  ;;  %2205 = vperm.xlu2 %3263, %v2179_v8  }
 0x236   : > { %v1733_v24 = vsel %vm445_vm11, %v1732_v3, %v3260_v2  ;;  %v1726_v53 = vsel %vm445_vm11, %v1725_v25, %v3259_v11 }
 0x237   : > { %2155 = vst [vmem:[#allocation3 + $0x20] sm:$0x33] %v2154_v21  ;;  %v3238_v10 = vpop.permute.xlu0 %3237  ;;  %v1734_v47 = vsel %vm447_vm12, %v1733_v24, %v1719_v61 }
 0x238   : > { %v3240_v9 = vunpack.i.h.bf16 %v3238_v10  ;;  %v3239_v33 = vunpack.i.l.bf16 %v3238_v10  ;;  %2250 = vperm.xlu0 %3261, %v2188_v35   ;;  %2240 = vperm.xlu1 %3262, %v2186_v7   ;;  %v2759_v10 = vld [vmem:[#allocation3 + $0x4] sm:$0xf] }
 0x23a   : > { %v1931_v42 = vsel %vm439_vm8, %v1930_v36, %v3239_v33  ;;  %v1938_v19 = vsel %vm439_vm8, %v1937_v37, %v3240_v9  ;;  %v2726_v5 = vld [vmem:[#allocation3 + $0x10] sm:$0xf]  ;;  %v2761_v40 = vld [vmem:[#allocation3 + $0x14] sm:$0xf]  ;;  %v2755_v9 = vld [vmem:[%s5284_s1 + $0x20] sm:$0xff] }
 0x23b   : > { %v1932_v48 = vsel %vm441_vm9, %v1931_v42, %v3164_v27  ;;  %v1939_v63 = vsel %vm441_vm9, %v1938_v19, %v3165_v1  ;;  %v2723_v1 = vor.u32 %v2759_v10, %v2720_v52  ;;  %v2184_v33 = vld [vmem:[%s5285_s2 + $0x38] sm:$0xff]  ;;  %v2187_v27 = vld [vmem:[%s5285_s2 + $0x50] sm:$0xff]  ;;  %v2756_v36 = vld [vmem:[%s5284_s1 + $0x28] sm:$0xff] }
 0x23c   : > { %v1933_v54 = vsel %vm443_vm10, %v1932_v48, %v3244_v41  ;;  %v1940_v4 = vsel %vm443_vm10, %v1939_v63, %v3245_v60  ;;  %v2190_v37 = vld [vmem:[%s5285_s2 + $0x68] sm:$0xff]  ;;  %v2757_v41 = vld [vmem:[%s5284_s1 + $0x30] sm:$0xff]  ;;  %v2754_v42 = vld [vmem:[%s5284_s1 + $0x18] sm:$0xff] }
 0x23d   : > { %v1934_v55 = vsel %vm445_vm11, %v1933_v54, %v3169_v6  ;;  %v1941_v34 = vsel %vm445_vm11, %v1940_v4, %v3170_v44  ;;  %2215 = vperm.xlu2 %3263, %v2181_v43   ;;  %v2758_v19 = vld [vmem:[%s5284_s1 + $0x38] sm:$0xff] }
 0x23e   : > { %v2176_v38 = vld [vmem:[#allocation3 + $0x20] sm:$0x33]  ;;  %v1935_v29 = vsel %vm447_vm12, %v1934_v55, %v3250_v17 }
 0x23f   : > { %v3253_v0 = vpop.permute.xlu0 %3252  ;;  %v2326_v28 = vunpack.c.l.b16 %v2176_v38  ;;  %v2327_v20 = vunpack.c.h.b16 %v2176_v38 }
 0x240   : > { %v3255_v23 = vunpack.i.h.bf16 %v3253_v0  ;;  %v3254_v51 = vunpack.i.l.bf16 %v3253_v0  ;;  %2265 = vperm.xlu0 %3261, %v2191_v30   ;;  %2255 = vperm.xlu1 %3262, %v2189_v22  }
 0x241   : > { %v2332_v39 = vpack.c.b16 %v2326_v28, %v2326_v28  ;;  %v2333_v26 = vpack.c.b16 %v2327_v20, %v2327_v20 }
 0x242   : > { %v1727_v32 = vsel %vm447_vm12, %v1726_v53, %v3255_v23  ;;  %v1942_v31 = vsel %vm447_vm12, %v1941_v34, %v3254_v51 }
 0x243   : > { %v1735_v46 = vpack.c.bf16 %v1734_v47, %v1727_v32  ;;  %v1943_v56 = vpack.c.bf16 %v1942_v31, %v1935_v29  ;;  %v2365_v58 = vsel %vm2363_vm13, %v2332_v39, 0  ;;  %v2368_v62 = vsel %vm2363_vm13, %v2333_v26, 0 }
 0x244   : > { %2375 = vmatpush.bf16.msra.mxu0 %v2365_v58  ;;  %2763 = vmatpush.bf16.msra.mxu2 %v2365_v58 }
 0x245   : > { %1736 = vst [vmem:[#allocation3 + $0x18] sm:$0x33] %v1735_v46  ;;  %v1945_v14 = vrot.slane %v1943_v56, 6  ;;  %2424 = vmatpush.bf16.msra.mxu1 %v2368_v62  ;;  %2766 = vmatpush.bf16.msra.mxu3 %v2368_v62 }
 0x246   : > { %2230 = vperm.xlu2 %3263, %v2184_v33  }
 0x247   : > { %1947 = vst [vmem:[#allocation3 + $0x18] sm:$0xcc] %v1945_v14 }
 0x248   : > { %2270 = vperm.xlu1 %3262, %v2192_v45  }
 0x24e   : > { %v2762_v50 = vld [vmem:[#allocation3 + $0x14] sm:$0xf0]  ;;  %v2728_v13 = vld [vmem:[#allocation3 + $0x18] sm:$0xf0]  ;;  %2245 = vperm.xlu2 %3263, %v2187_v27  }
 0x24f   : > { %v2727_v21 = vor.u32 %v2762_v50, %v2726_v5  ;;  %v2731_v12 = vor.u32 %v2761_v40, %v2728_v13 }
 0x251   : > { %2376 = vmatpush.bf16.msra.mxu0 %v2727_v21  ;;  %2764 = vmatpush.bf16.msra.mxu2 %v2727_v21 }
 0x252   : > { %2425 = vmatpush.bf16.msra.mxu1 %v2731_v12  ;;  %2767 = vmatpush.bf16.msra.mxu3 %v2731_v12 }
 0x255   : > { %2377 = vmatpush.bf16.msra.mxu0 %v2719_v15  ;;  %2765 = vmatpush.bf16.msra.mxu2 %v2719_v15 }
 0x256   : > { %2426 = vmatpush.bf16.msra.mxu1 %v2723_v1  ;;  %2768 = vmatpush.bf16.msra.mxu3 %v2723_v1 }
 0x257   : > { %2260 = vperm.xlu2 %3263, %v2190_v37  }
 0x258   : > { %2732 = vmatmul.msk.bf16.vlgmr.msra.gmra.mxu0 %vm2338_vm14, %v2751_v57  ;;  %2736 = vmatmul.msk.bf16.vlgmr.msra.gmra.mxu2 %vm2338_vm14, %v2755_v9 }
 0x259   : > { %2740 = vmatmul.msk.bf16.vlgmr.msra.gmra.mxu1 %vm2338_vm14, %v2751_v57  ;;  %2744 = vmatmul.msk.bf16.vlgmr.msra.gmra.mxu3 %vm2338_vm14, %v2755_v9 }
 0x268   : > { %2733 = vmatmul.msk.bf16.gmra.mxu0 %vm2338_vm14, %v2752_v16  ;;  %2737 = vmatmul.msk.bf16.gmra.mxu2 %vm2338_vm14, %v2756_v36 }
 0x269   : > { %2741 = vmatmul.msk.bf16.gmra.mxu1 %vm2338_vm14, %v2752_v16  ;;  %2745 = vmatmul.msk.bf16.gmra.mxu3 %vm2338_vm14, %v2756_v36 }
 0x278   : > { %2734 = vmatmul.msk.bf16.gmra.mxu0 %vm2338_vm14, %v2753_v49  ;;  %2738 = vmatmul.msk.bf16.gmra.mxu2 %vm2338_vm14, %v2757_v41 }
 0x279   : > { %2742 = vmatmul.msk.bf16.gmra.mxu1 %vm2338_vm14, %v2753_v49  ;;  %2746 = vmatmul.msk.bf16.gmra.mxu3 %vm2338_vm14, %v2757_v41 }
 0x288   : > { %2735 = vmatmul.msk.bf16.gmra.mxu0 %vm2338_vm14, %v2754_v42  ;;  %2739 = vmatmul.msk.bf16.gmra.mxu2 %vm2338_vm14, %v2758_v19 }
 0x289   : > { %2743 = vmatmul.msk.bf16.gmra.mxu1 %vm2338_vm14, %v2754_v42  ;;  %2747 = vmatmul.msk.bf16.gmra.mxu3 %vm2338_vm14, %v2758_v19 }
 0x28f   : > { %v2206_v6 = vpop.permute.xlu2 %2205 }
 0x292   : > { %v2196_v2 = vpop.permute.xlu0 %2195  ;;  %v2201_v38 = vpop.permute.xlu1 %2200 }
 0x297   : > { %v2216_v23 = vpop.permute.xlu2 %2215 }
 0x29a   : > { %v2211_v46 = vpop.permute.xlu1 %2210  ;;  %v2221_v40 = vpop.permute.xlu0 %2220 }
 0x2a0   : > { %v5244_v14 = vpop.permute.xlu2 %2230 }
 0x2a2   : > { %v2226_v9 = vpop.permute.xlu1 %2225  ;;  %v2236_v16 = vpop.permute.xlu0 %2235 }
 0x2a8   : > { %v2246_v52 = vpop.permute.xlu2 %2245 }
 0x2d5   : > { %v2379_v48 = vpop.f32.mrf.mxu0 }
 0x2d6   : > { %v2380_v63 = vadd.f32 %v2379_v48, %v2196_v2  ;;  %v2428_v60 = vpop.f32.mrf.mxu1 }
 0x2d7   : > { %v2429_v11 = vadd.f32 %v2428_v60, %v2196_v2  ;;  %v2261_v60 = vpop.permute.xlu2 %2260 }
 0x2d8   : > { %v2468_v54 = vmax.f32 %v2380_v63, 0.0 }
 0x2d9   : > { %v2469_v44 = vmax.f32 %v2429_v11, 0.0 }
 0x2db   : > { %v2399_v25 = vpop.f32.mrf.mxu2  ;;  %v2500_v3 = vadd.f32 %v2469_v44, %v2468_v54 }
 0x2dc   : > { %v2448_v4 = vpop.f32.mrf.mxu3  ;;  %v2400_v48 = vadd.f32 %v2399_v25, %v2236_v16 }
 0x2dd   : > { %2501 = vadd.xlane.f32.xlu2 %v2500_v3  ;;  %v2381_v35 = vpop.f32.mrf.mxu0  ;;  %v2449_v63 = vadd.f32 %v2448_v4, %v2236_v16 }
 0x2de   : > { %v2382_v7 = vadd.f32 %v2381_v35, %v2201_v38  ;;  %v2430_v24 = vpop.f32.mrf.mxu1 }
 0x2df   : > { %v2431_v0 = vadd.f32 %v2430_v24, %v2201_v38 }
 0x2e0   : > { %v2470_v55 = vmax.f32 %v2382_v7, 0.0  ;;  %v2241_v7 = vpop.permute.xlu1 %2240 }
 0x2e1   : > { %v2471_v28 = vmax.f32 %v2431_v0, 0.0 }
 0x2e3   : > { %v5240_v20 = vpop.f32.mrf.mxu2  ;;  %v2503_v17 = vadd.f32 %v2471_v28, %v2470_v55  ;;  %v2484_v55 = vmax.f32 %v2400_v48, 0.0  ;;  %v2485_v28 = vmax.f32 %v2449_v63, 0.0 }
 0x2e4   : > { %v5242_v53 = vpop.f32.mrf.mxu3 }
 0x2e5   : > { %2504 = vadd.xlane.f32.xlu0 %v2503_v17  ;;  %v2384_v51 = vpop.f32.mrf.mxu0 }
 0x2e6   : > { %v2385_v61 = vadd.f32 %v2384_v51, %v2206_v6  ;;  %v2433_v34 = vpop.f32.mrf.mxu1 }
 0x2e7   : > { %v2434_v39 = vadd.f32 %v2433_v34, %v2206_v6 }
 0x2e8   : > { %v2472_v26 = vmax.f32 %v2385_v61, 0.0  ;;  %v2402_v61 = vadd.f32 %v5240_v20, %v2241_v7 }
 0x2e9   : > { %v2473_v32 = vmax.f32 %v2434_v39, 0.0  ;;  %v2451_v39 = vadd.f32 %v5242_v53, %v2241_v7 }
 0x2eb   : > { %v2404_v47 = vpop.f32.mrf.mxu2  ;;  %v2506_v29 = vadd.f32 %v2473_v32, %v2472_v26 }
 0x2ec   : > { %v2453_v31 = vpop.f32.mrf.mxu3  ;;  %v2405_v15 = vadd.f32 %v2404_v47, %v2246_v52 }
 0x2ed   : > { %2507 = vadd.xlane.f32.xlu1 %v2506_v29  ;;  %v2386_v56 = vpop.f32.mrf.mxu0  ;;  %v2454_v10 = vadd.f32 %v2453_v31, %v2246_v52  ;;  %v2524_v29 = vadd.f32 %v2485_v28, %v2484_v55 }
 0x2ee   : > { %v2387_v58 = vadd.f32 %v2386_v56, %v2211_v46  ;;  %v2435_v62 = vpop.f32.mrf.mxu1  ;;  %v2488_v49 = vmax.f32 %v2405_v15, 0.0 }
 0x2ef   : > { %v2436_v30 = vadd.f32 %v2435_v62, %v2211_v46  ;;  %v2489_v41 = vmax.f32 %v2454_v10, 0.0  ;;  %v2486_v46 = vmax.f32 %v2402_v61, 0.0  ;;  %v2487_v62 = vmax.f32 %v2451_v39, 0.0 }
 0x2f0   : > { %v2474_v22 = vmax.f32 %v2387_v58, 0.0 }
 0x2f1   : > { %v2475_v8 = vmax.f32 %v2436_v30, 0.0  ;;  %v2530_v44 = vadd.f32 %v2489_v41, %v2488_v49 }
 0x2f3   : > { %v2406_v5 = vpop.f32.mrf.mxu2  ;;  %v2509_v50 = vadd.f32 %v2475_v8, %v2474_v22 }
 0x2f4   : > { %v2455_v13 = vpop.f32.mrf.mxu3 }
 0x2f5   : > { %2510 = vadd.xlane.f32.xlu2 %v2509_v50  ;;  %v2389_v21 = vpop.f32.mrf.mxu0 }
 0x2f6   : > { %v2390_v12 = vadd.f32 %v2389_v21, %v2216_v23  ;;  %v2438_v59 = vpop.f32.mrf.mxu1 }
 0x2f7   : > { %v2439_v45 = vadd.f32 %v2438_v59, %v2216_v23  ;;  %v2251_v23 = vpop.permute.xlu0 %2250  ;;  %v2527_v59 = vadd.f32 %v2487_v62, %v2486_v46 }
 0x2f8   : > { %v2476_v43 = vmax.f32 %v2390_v12, 0.0  ;;  %v2407_v26 = vadd.f32 %v2406_v5, %v2251_v23  ;;  %v2456_v32 = vadd.f32 %v2455_v13, %v2251_v23  ;;  %v2256_v5 = vpop.permute.xlu1 %2255 }
 0x2f9   : > { %v2477_v18 = vmax.f32 %v2439_v45, 0.0 }
 0x2fa   : > { %v2490_v30 = vmax.f32 %v2407_v26, 0.0  ;;  %v2491_v22 = vmax.f32 %v2456_v32, 0.0 }
 0x2fb   : > { %v2409_v1 = vpop.f32.mrf.mxu2  ;;  %v2512_v57 = vadd.f32 %v2477_v18, %v2476_v43 }
 0x2fc   : > { %v2458_v33 = vpop.f32.mrf.mxu3  ;;  %v2410_v12 = vadd.f32 %v2409_v1, %v2256_v5  ;;  %v2533_v45 = vadd.f32 %v2491_v22, %v2490_v30 }
 0x2fd   : > { %2513 = vadd.xlane.f32.xlu2 %v2512_v57  ;;  %v2391_v27 = vpop.f32.mrf.mxu0  ;;  %v2459_v43 = vadd.f32 %v2458_v33, %v2256_v5 }
 0x2fe   : > { %v2392_v36 = vadd.f32 %v2391_v27, %v2221_v40  ;;  %v2440_v37 = vpop.f32.mrf.mxu1  ;;  %v2492_v10 = vmax.f32 %v2410_v12, 0.0 }
 0x2ff   : > { %v2441_v42 = vadd.f32 %v2440_v37, %v2221_v40  ;;  %v2266_v21 = vpop.permute.xlu0 %2265  ;;  %v2493_v57 = vmax.f32 %v2459_v43, 0.0 }
 0x300   : > { %v2478_v19 = vmax.f32 %v2392_v36, 0.0  ;;  %v2271_v36 = vpop.permute.xlu1 %2270 }
 0x301   : > { %v2479_v2 = vmax.f32 %v2441_v42, 0.0  ;;  %v2536_v41 = vadd.f32 %v2493_v57, %v2492_v10 }
 0x303   : > { %v2411_v11 = vpop.f32.mrf.mxu2  ;;  %v2515_v54 = vadd.f32 %v2479_v2, %v2478_v19 }
 0x304   : > { %v2412_v6 = vadd.f32 %v2411_v11, %v2261_v60  ;;  %v2460_v3 = vpop.f32.mrf.mxu3 }
 0x305   : > { %v2461_v38 = vadd.f32 %v2460_v3, %v2261_v60  ;;  %2516 = vadd.xlane.f32.xlu0 %v2515_v54  ;;  %2531 = vadd.xlane.f32.xlu2 %v2530_v44  ;;  %v2394_v35 = vpop.f32.mrf.mxu0 }
 0x306   : > { %v2395_v24 = vadd.f32 %v2394_v35, %v2226_v9  ;;  %v2443_v0 = vpop.f32.mrf.mxu1  ;;  %v2494_v51 = vmax.f32 %v2412_v6, 0.0 }
 0x307   : > { %v2444_v17 = vadd.f32 %v2443_v0, %v2226_v9  ;;  %v2495_v25 = vmax.f32 %v2461_v38, 0.0 }
 0x308   : > { %v2480_v4 = vmax.f32 %v2395_v24, 0.0 }
 0x309   : > { %v2481_v34 = vmax.f32 %v2444_v17, 0.0  ;;  %v2539_v31 = vadd.f32 %v2495_v25, %v2494_v51 }
 0x30b   : > { %v2518_v47 = vadd.f32 %v2481_v34, %v2480_v4  ;;  %v2414_v56 = vpop.f32.mrf.mxu2 }
 0x30c   : > { %v2463_v8 = vpop.f32.mrf.mxu3  ;;  %v2415_v52 = vadd.f32 %v2414_v56, %v2266_v21 }
 0x30d   : > { %2519 = vadd.xlane.f32.xlu1 %v2518_v47  ;;  %2525 = vadd.xlane.f32.xlu0 %v2524_v29  ;;  %v2396_v58 = vpop.f32.mrf.mxu0  ;;  %v2464_v18 = vadd.f32 %v2463_v8, %v2266_v21 }
 0x30e   : > { %2540 = vadd.xlane.f32.xlu2 %v2539_v31  ;;  %v2397_v20 = vadd.f32 %v2396_v58, %v5244_v14  ;;  %v2445_v50 = vpop.f32.mrf.mxu1  ;;  %v2496_v9 = vmax.f32 %v2415_v52, 0.0 }
 0x30f   : > { %v2446_v53 = vadd.f32 %v2445_v50, %v5244_v14  ;;  %v2497_v27 = vmax.f32 %v2464_v18, 0.0 }
 0x310   : > { %v2482_v40 = vmax.f32 %v2397_v20, 0.0 }
 0x311   : > { %v2483_v13 = vmax.f32 %v2446_v53, 0.0  ;;  %v2542_v1 = vadd.f32 %v2497_v27, %v2496_v9 }
 0x313   : > { %v2521_v15 = vadd.f32 %v2483_v13, %v2482_v40  ;;  %v2416_v16 = vpop.f32.mrf.mxu2 }
 0x314   : > { %v2465_v14 = vpop.f32.mrf.mxu3  ;;  %v2417_v37 = vadd.f32 %v2416_v16, %v2271_v36 }
 0x315   : > { %2528 = vadd.xlane.f32.xlu1 %v2527_v59  ;;  %2534 = vadd.xlane.f32.xlu0 %v2533_v45  ;;  %v2466_v49 = vadd.f32 %v2465_v14, %v2271_v36 }
 0x316   : > { %2522 = vadd.xlane.f32.xlu2 %v2521_v15  ;;  %v2498_v33 = vmax.f32 %v2417_v37, 0.0 }
 0x317   : > { %v2499_v42 = vmax.f32 %v2466_v49, 0.0 }
 0x319   : > { %v2545_v19 = vadd.f32 %v2499_v42, %v2498_v33 }
 0x31d   : > { %2537 = vadd.xlane.f32.xlu1 %v2536_v41  ;;  %2543 = vadd.xlane.f32.xlu0 %v2542_v1 }
 0x325   : > { %2546 = vadd.xlane.f32.xlu1 %v2545_v19 }
 0x350   : > { %v2502_v2 = vpop.xlane.xlu2 %2501 }
 0x351   : > { %v2548_v48 = vmul.f32 0.00390625, %v2502_v2 }
 0x353   : > { %2564 = vxpose.xlu2.b32.start [1/16] (narrow) %v2548_v48, 8 }
 0x358   : > { %v2505_v63 = vpop.xlane.xlu0 %2504 }
 0x359   : > { %v2549_v60 = vmul.f32 0.00390625, %v2505_v63 }
 0x35b   : > { %2565 = vxpose.xlu2.b32.cont [2/16] (narrow) %v2549_v60, 8 }
 0x360   : > { %v2508_v11 = vpop.xlane.xlu1 %2507 }
 0x361   : > { %v2550_v54 = vmul.f32 0.00390625, %v2508_v11 }
 0x363   : > { %2566 = vxpose.xlu2.b32.cont [3/16] (narrow) %v2550_v54, 8 }
 0x368   : > { %v2511_v44 = vpop.xlane.xlu2 %2510 }
 0x369   : > { %v2551_v6 = vmul.f32 0.00390625, %v2511_v44 }
 0x36b   : > { %2567 = vxpose.xlu2.b32.cont [4/16] (narrow) %v2551_v6, 8 }
 0x370   : > { %v2514_v3 = vpop.xlane.xlu2 %2513 }
 0x371   : > { %v2552_v38 = vmul.f32 0.00390625, %v2514_v3 }
 0x373   : > { %2568 = vxpose.xlu2.b32.cont [5/16] (narrow) %v2552_v38, 8 }
 0x378   : > { %v2517_v35 = vpop.xlane.xlu0 %2516  ;;  %v2532_v7 = vpop.xlane.xlu2 %2531 }
 0x379   : > { %v2553_v24 = vmul.f32 0.00390625, %v2517_v35  ;;  %v2558_v34 = vmul.f32 0.00390625, %v2532_v7 }
 0x37b   : > { %2569 = vxpose.xlu2.b32.cont [6/16] (narrow) %v2553_v24, 8 }
 0x380   : > { %v2520_v0 = vpop.xlane.xlu1 %2519  ;;  %v2526_v51 = vpop.xlane.xlu0 %2525 }
 0x381   : > { %v2554_v55 = vmul.f32 0.00390625, %v2520_v0  ;;  %v2541_v28 = vpop.xlane.xlu2 %2540  ;;  %v2556_v25 = vmul.f32 0.00390625, %v2526_v51 }
 0x382   : > { %v2561_v29 = vmul.f32 0.00390625, %v2541_v28 }
 0x383   : > { %2570 = vxpose.xlu2.b32.cont [7/16] (narrow) %v2554_v55, 8 }
 0x388   : > { %v2529_v4 = vpop.xlane.xlu1 %2528  ;;  %v2535_v39 = vpop.xlane.xlu0 %2534 }
 0x389   : > { %v2523_v17 = vpop.xlane.xlu2 %2522  ;;  %v2557_v61 = vmul.f32 0.00390625, %v2529_v4  ;;  %v2559_v26 = vmul.f32 0.00390625, %v2535_v39 }
 0x38a   : > { %v2555_v23 = vmul.f32 0.00390625, %v2523_v17 }
 0x38c   : > { %2571 = vxpose.xlu2.b32.cont [8/16] (narrow) %v2555_v23, 8 }
 0x390   : > { %v2538_v32 = vpop.xlane.xlu1 %2537  ;;  %v2544_v31 = vpop.xlane.xlu0 %2543 }
 0x391   : > { %v2560_v47 = vmul.f32 0.00390625, %v2538_v32  ;;  %v2562_v46 = vmul.f32 0.00390625, %v2544_v31 }
 0x394   : > { %2572 = vxpose.xlu2.b32.cont [9/16] (narrow) %v2556_v25, 8 }
 0x398   : > { %v2547_v56 = vpop.xlane.xlu1 %2546 }
 0x399   : > { %v2563_v58 = vmul.f32 0.00390625, %v2547_v56 }
 0x39c   : > { %2573 = vxpose.xlu2.b32.cont [10/16] (narrow) %v2557_v61, 8 }
 0x3a4   : > { %2574 = vxpose.xlu2.b32.cont [11/16] (narrow) %v2558_v34, 8 }
 0x3ac   : > { %2575 = vxpose.xlu2.b32.cont [12/16] (narrow) %v2559_v26, 8 }
 0x3b4   : > { %2576 = vxpose.xlu2.b32.cont [13/16] (narrow) %v2560_v47, 8 }
 0x3bc   : > { %2577 = vxpose.xlu2.b32.cont [14/16] (narrow) %v2561_v29, 8 }
 0x3c4   : > { %2578 = vxpose.xlu2.b32.cont [15/16] (narrow) %v2562_v46, 8 }
 0x3cc   : > { %2579 = vxpose.xlu2.b32.end [16/16] (narrow) %v2563_v58, 8 }
 0x3ed   : > { %v2580_v62 = vpop.trf.xlu2 }
 0x3ee   : > { %2596 = vst [vmem:[%s189_s22] sm:$0x1] %v2580_v62 }
 0x3ef   : > { %3321 = shalt.err (!%p3318_p4)
}
 0x3f0   : > { %2771 = dma.vmem_to_hbm [thread:$0]  (%p3447_p10), %s2609_s27, 16, %s2611_s26, %s2598_s28  }
 0x3f1 PF: > { %p2782_p5 = scmp.ge.s32.totalorder %s3360_s15, 2  ;;  %s2622_s29 = sand.u32 1, %s3348_s12  }
 0x3f2   : > { %s2623_s8 = scalar_lea.sflag [#allocation6], %s2622_s29 }
 0x3f3   : > { %p2778_p7 = pnand %p2782_p5, %p3451_p11 }
 0x3f5   : > { %p2779_p8 = pneg %p2778_p7 }
 0x3f7   : > { %3343 = dma.done.wait (%p2779_p8), %s2623_s8, 16  }
 0x3f8   : > { %3345 = vsyncadd (%p2779_p8), %s2623_s8, 4294967280  ;;  %p16_p9 = scmp.ge.s32.totalorder %s3423_s18, 6   ;;  %s5392_s12 = smov %s3352_s13 }
 0x3f9   : > { %s5393_s13 = smov %s3356_s14  ;;  %s5394_s14 = smov %s3435_s21 }
 0x3fa   : > { %s5395_s15 = smov %s3423_s18  ;;  %18 = sbr.rel (!%p16_p9) target bundleno = 5 (0x5), region = 77 }
 0x3ff   :  { %2628 = vsyncpa [#allocation5], 1 }
 0x400   :  { %2630 = vsyncpa [#allocation5 + $0x1], 1 }
 0x401   :  { %2631 = vsyncpa [#allocation6], 1 }
 0x402   :  { %2633 = vsyncpa [#allocation6 + $0x1], 1 }

</bundles_post_ra>
